<compile_context>
chip_gen: v6e
topology: v6e:2x2x1
jax: 0.10.0
libtpu: 0.0.40
codegen_flags: <defaults>
</compile_context>

<pallas_src>
from functools import partial

import jax
import jax.numpy as jnp
from jax.experimental import pallas as pl
from jax.experimental.pallas import tpu as pltpu

# ---- problem dimensions -----------------------------------------------------
B = 2              # batch (small per spec; raise to >=128 to amortize weight DMA)
C, H, W = 4, 16, 16
DV = 32            # x_vector feature dim
DI = C * H * W     # flattened image dim = 1024
HV = 32            # vector_network output features
HI = 600           # image_network output features (HV + HI == 632)
D_CAT = HV + HI    # 632  -> matches nn.Linear(632, 84)
D_HID = 84
D_OUT = 1

# lane-aligned padded dims (zero-padded weights; padding is mathematically inert)
HI_P = 640         # 600 -> 5 * 128 lanes
D_HID_P = 128      # 84  -> 128 lanes
D_OUT_P = 128      # 1   -> 128 lanes (lane-dense output store; real value in col 0)


# ---- Pallas kernel: fused forward pass --------------------------------------
def value_net_kernel(xv_ref, xi_ref,
                     wv_ref, bv_ref,
                     wi_ref, bi_ref,
                     w1v_ref, w1i_ref, b1_ref,
                     w2_ref, b2_ref,
                     out_ref):
    # vector_network: Linear(32 -> 32) + ReLU            (tiny, stays f32)
    h_vec = jnp.dot(xv_ref[...], wv_ref[...],
                    preferred_element_type=jnp.float32) + bv_ref[...]
    h_vec = jnp.maximum(h_vec, 0.0)                      # [B, HV] f32

    # image_network: Linear(1024 -> 640pad) + ReLU       (bf16 MXU, f32 accumulate)
    # 1/255 scale and the NHWC->NCHW permute are pre-folded into wi's rows.
    h_img = jnp.dot(xi_ref[...].astype(jnp.bfloat16), wi_ref[...],
                    preferred_element_type=jnp.float32) + bi_ref[...]
    h_img = jnp.maximum(h_img, 0.0)                      # [B, HI_P] f32 (pad lanes = 0)

    # value_head[0]: Linear(632 -> 84pad) on cat([h_vec, h_img], 1); the concat is
    # folded into a split matmul: cat @ W1 == h_vec @ W1[:HV] + h_img @ W1[HV:].
    h = (jnp.dot(h_vec.astype(jnp.bfloat16), w1v_ref[...],
                 preferred_element_type=jnp.float32)
         + jnp.dot(h_img.astype(jnp.bfloat16), w1i_ref[...],
                   preferred_element_type=jnp.float32)
         + b1_ref[...])
    h = jnp.maximum(h, 0.0)                              # [B, D_HID_P] f32 (pad = 0)

    # value_head[2]: Linear(84 -> 1), output padded to 128 lanes (unmasked vst);
    # only column 0 is meaningful, the rest are exact zeros.
    out_ref[...] = (jnp.dot(h, w2_ref[...], preferred_element_type=jnp.float32)
                    + b2_ref[...])                       # [B, D_OUT_P] f32


# ---- wrapper -----------------------------------------------------------------
@partial(jax.jit, static_argnames=())
def value_network_forward(x_vector, x_image, kernel_params):
    b = x_vector.shape[0]
    # Plain NHWC flatten (no transpose / extra XLA copy): the permute(0,3,1,2) of the
    # PyTorch forward has been folded into wi's row order at fold time.
    xi_flat = x_image.reshape(b, DI).astype(jnp.float32)
    xv = x_vector.astype(jnp.float32)

    vmem = pl.BlockSpec(memory_space=pltpu.MemorySpace.VMEM)
    n_in = 2 + len(kernel_params)

    out_padded = pl.pallas_call(
        value_net_kernel,
        out_shape=jax.ShapeDtypeStruct((b, D_OUT_P), jnp.float32),
        in_specs=[vmem] * n_in,
        out_specs=vmem,
    )(xv, xi_flat, *kernel_params)
    return out_padded[:, :D_OUT]                         # [B, 1]


# ---- deterministic parameter init (PyTorch nn.Linear default: U(+-1/sqrt(fan_in))) ---
def init_linear(key, fan_in, fan_out):
    kw, kb = jax.random.split(key)
    bound = 1.0 / jnp.sqrt(jnp.float32(fan_in))
    # stored as [in, out] so compute does x @ W (== PyTorch x @ W.T with W [out, in])
    w = jax.random.uniform(kw, (fan_in, fan_out), jnp.float32, -bound, bound)
    b_ = jax.random.uniform(kb, (1, fan_out), jnp.float32, -bound, bound)
    return w, b_


def make_params(key):
    k1, k2, k3, k4 = jax.random.split(key, 4)
    wv, bv = init_linear(k1, DV, HV)        # vector_network stand-in
    wi, bi = init_linear(k2, DI, HI)        # image_network stand-in (NCHW row order)
    w1, b1 = init_linear(k3, D_CAT, D_HID)  # value_head[0]: Linear(632, 84)
    w2, b2 = init_linear(k4, D_HID, D_OUT)  # value_head[2]: Linear(84, 1)
    return (wv, bv, wi, bi, w1, b1, w2, b2)


def fold_params_for_kernel(params):
    """One-time fold: NCHW permute + 1/255 scale into wi, zero-pad to lane-aligned
    shapes, cast the big weights to bf16."""
    wv, bv, wi, bi, w1, b1, w2, b2 = params

    # fold permute(0,3,1,2) (NCHW flatten) into the row order of wi so the kernel can
    # consume a plain NHWC flatten; fold the 1/255 pixel scale in as well.
    wi_f = (wi / 255.0).reshape(C, H, W, HI).transpose(1, 2, 0, 3).reshape(DI, HI)

    # zero-pad to lane-aligned shapes (padding rows/cols are exact zeros).
    wi_p = jnp.zeros((DI, HI_P), jnp.float32).at[:, :HI].set(wi_f)
    bi_p = jnp.zeros((1, HI_P), jnp.float32).at[:, :HI].set(bi)
    w1v = jnp.zeros((HV, D_HID_P), jnp.float32).at[:, :D_HID].set(w1[:HV])
    w1i = jnp.zeros((HI_P, D_HID_P), jnp.float32).at[:HI, :D_HID].set(w1[HV:])
    b1_p = jnp.zeros((1, D_HID_P), jnp.float32).at[:, :D_HID].set(b1)
    w2_p = jnp.zeros((D_HID_P, D_OUT_P), jnp.float32).at[:D_HID, :D_OUT].set(w2)
    b2_p = jnp.zeros((1, D_OUT_P), jnp.float32).at[:, :D_OUT].set(b2)

    # big weights in bf16 (halves dominant HBM->VMEM DMA, native bf16 MXU path);
    # small weights and all biases stay f32 (elementwise math stays f32, v5e-safe).
    return (wv, bv,
            wi_p.astype(jnp.bfloat16), bi_p,
            w1v.astype(jnp.bfloat16), w1i.astype(jnp.bfloat16), b1_p,
            w2_p, b2_p)


# ---- pure-JAX f32 reference (original torch semantics) -----------------------
def reference_forward(x_vector, x_image, params):
    wv, bv, wi, bi, w1, b1, w2, b2 = params
    b = x_image.shape[0]
    xi = jnp.transpose(x_image, (0, 3, 1, 2)).reshape(b, DI) / 255.0
    h_vec = jnp.maximum(x_vector @ wv + bv, 0.0)
    h_img = jnp.maximum(xi @ wi + bi, 0.0)
    x = jnp.concatenate([h_vec, h_img], axis=1)          # [B, 632]
    h = jnp.maximum(x @ w1 + b1, 0.0)
    return h @ w2 + b2                                   # [B, 1]


if __name__ == "__main__":
    key = jax.random.PRNGKey(0)
    k_img, k_vec, k_par = jax.random.split(key, 3)

    x_image = jax.random.uniform(k_img, (B, H, W, C), jnp.float32, 0.0, 255.0)
    x_vector = jax.random.normal(k_vec, (B, DV), jnp.float32)

    params = make_params(k_par)
    kernel_params = fold_params_for_kernel(params)

    out = value_network_forward(x_vector, x_image, kernel_params)
    out = jax.block_until_ready(out)

    ref = reference_forward(x_vector, x_image, params)
    assert out.shape == (B, D_OUT), out.shape
    max_err = float(jnp.max(jnp.abs(out - ref)))
    # bf16 weight quantization => loosened tolerance vs the f32 reference.
    assert jnp.allclose(out, ref, atol=3e-2, rtol=3e-2), (out, ref, max_err)

    print("KERNEL_OK")
</pallas_src>

<mosaic_0001>
module attributes {stable_mosaic.version = 11 : i64} {
  func.func @value_net_kernel(%arg0: memref<2x32xf32, #tpu.memory_space<vmem>>, %arg1: memref<2x1024xf32, #tpu.memory_space<vmem>>, %arg2: memref<32x32xf32, #tpu.memory_space<vmem>>, %arg3: memref<1x32xf32, #tpu.memory_space<vmem>>, %arg4: memref<1024x640xbf16, #tpu.memory_space<vmem>>, %arg5: memref<1x640xf32, #tpu.memory_space<vmem>>, %arg6: memref<32x128xbf16, #tpu.memory_space<vmem>>, %arg7: memref<640x128xbf16, #tpu.memory_space<vmem>>, %arg8: memref<1x128xf32, #tpu.memory_space<vmem>>, %arg9: memref<128x128xf32, #tpu.memory_space<vmem>>, %arg10: memref<1x128xf32, #tpu.memory_space<vmem>>, %arg11: memref<2x128xf32, #tpu.memory_space<vmem>>) attributes {dimension_semantics = [], scalar_prefetch = 0 : i64, scratch_operands = 0 : i64, tpu.core_type = #tpu.core_type<tc>} {
    %c0 = arith.constant 0 : index
    %c0_0 = arith.constant 0 : index
    %0 = vector.load %arg0[%c0, %c0_0] : memref<2x32xf32, #tpu.memory_space<vmem>>, vector<2x32xf32>
    %c0_1 = arith.constant 0 : index
    %c0_2 = arith.constant 0 : index
    %1 = vector.load %arg2[%c0_1, %c0_2] : memref<32x32xf32, #tpu.memory_space<vmem>>, vector<32x32xf32>
    %cst = arith.constant dense<0.000000e+00> : vector<2x32xf32>
    %2 = tpu.matmul %0, %1, %cst {dimension_numbers = #tpu.dot_dimension_numbers<[1], [0], [0], [1], [0, 0, 1, 1], [], []>} : vector<2x32xf32>, vector<32x32xf32>, vector<2x32xf32> -> vector<2x32xf32>
    %c0_3 = arith.constant 0 : index
    %c0_4 = arith.constant 0 : index
    %3 = vector.load %arg3[%c0_3, %c0_4] : memref<1x32xf32, #tpu.memory_space<vmem>>, vector<1x32xf32>
    %4 = vector.broadcast %3 : vector<1x32xf32> to vector<2x32xf32>
    %5 = arith.addf %2, %4 : vector<2x32xf32>
    %cst_5 = arith.constant 0.000000e+00 : f32
    %6 = vector.broadcast %cst_5 : f32 to vector<2x32xf32>
    %7 = arith.maximumf %5, %6 : vector<2x32xf32>
    %c0_6 = arith.constant 0 : index
    %c0_7 = arith.constant 0 : index
    %8 = vector.load %arg1[%c0_6, %c0_7] : memref<2x1024xf32, #tpu.memory_space<vmem>>, vector<2x1024xf32>
    %9 = arith.truncf %8 : vector<2x1024xf32> to vector<2x1024xbf16>
    %c0_8 = arith.constant 0 : index
    %c0_9 = arith.constant 0 : index
    %10 = vector.load %arg4[%c0_8, %c0_9] : memref<1024x640xbf16, #tpu.memory_space<vmem>>, vector<1024x640xbf16>
    %cst_10 = arith.constant dense<0.000000e+00> : vector<2x640xf32>
    %11 = tpu.matmul %9, %10, %cst_10 {dimension_numbers = #tpu.dot_dimension_numbers<[1], [0], [0], [1], [0, 0, 1, 1], [], []>} : vector<2x1024xbf16>, vector<1024x640xbf16>, vector<2x640xf32> -> vector<2x640xf32>
    %c0_11 = arith.constant 0 : index
    %c0_12 = arith.constant 0 : index
    %12 = vector.load %arg5[%c0_11, %c0_12] : memref<1x640xf32, #tpu.memory_space<vmem>>, vector<1x640xf32>
    %13 = vector.broadcast %12 : vector<1x640xf32> to vector<2x640xf32>
    %14 = arith.addf %11, %13 : vector<2x640xf32>
    %cst_13 = arith.constant 0.000000e+00 : f32
    %15 = vector.broadcast %cst_13 : f32 to vector<2x640xf32>
    %16 = arith.maximumf %14, %15 : vector<2x640xf32>
    %17 = arith.truncf %7 : vector<2x32xf32> to vector<2x32xbf16>
    %c0_14 = arith.constant 0 : index
    %c0_15 = arith.constant 0 : index
    %18 = vector.load %arg6[%c0_14, %c0_15] : memref<32x128xbf16, #tpu.memory_space<vmem>>, vector<32x128xbf16>
    %cst_16 = arith.constant dense<0.000000e+00> : vector<2x128xf32>
    %19 = tpu.matmul %17, %18, %cst_16 {dimension_numbers = #tpu.dot_dimension_numbers<[1], [0], [0], [1], [0, 0, 1, 1], [], []>} : vector<2x32xbf16>, vector<32x128xbf16>, vector<2x128xf32> -> vector<2x128xf32>
    %20 = arith.truncf %16 : vector<2x640xf32> to vector<2x640xbf16>
    %c0_17 = arith.constant 0 : index
    %c0_18 = arith.constant 0 : index
    %21 = vector.load %arg7[%c0_17, %c0_18] : memref<640x128xbf16, #tpu.memory_space<vmem>>, vector<640x128xbf16>
    %cst_19 = arith.constant dense<0.000000e+00> : vector<2x128xf32>
    %22 = tpu.matmul %20, %21, %cst_19 {dimension_numbers = #tpu.dot_dimension_numbers<[1], [0], [0], [1], [0, 0, 1, 1], [], []>} : vector<2x640xbf16>, vector<640x128xbf16>, vector<2x128xf32> -> vector<2x128xf32>
    %23 = arith.addf %19, %22 : vector<2x128xf32>
    %c0_20 = arith.constant 0 : index
    %c0_21 = arith.constant 0 : index
    %24 = vector.load %arg8[%c0_20, %c0_21] : memref<1x128xf32, #tpu.memory_space<vmem>>, vector<1x128xf32>
    %25 = vector.broadcast %24 : vector<1x128xf32> to vector<2x128xf32>
    %26 = arith.addf %23, %25 : vector<2x128xf32>
    %cst_22 = arith.constant 0.000000e+00 : f32
    %27 = vector.broadcast %cst_22 : f32 to vector<2x128xf32>
    %28 = arith.maximumf %26, %27 : vector<2x128xf32>
    %c0_23 = arith.constant 0 : index
    %c0_24 = arith.constant 0 : index
    %29 = vector.load %arg9[%c0_23, %c0_24] : memref<128x128xf32, #tpu.memory_space<vmem>>, vector<128x128xf32>
    %cst_25 = arith.constant dense<0.000000e+00> : vector<2x128xf32>
    %30 = tpu.matmul %28, %29, %cst_25 {dimension_numbers = #tpu.dot_dimension_numbers<[1], [0], [0], [1], [0, 0, 1, 1], [], []>} : vector<2x128xf32>, vector<128x128xf32>, vector<2x128xf32> -> vector<2x128xf32>
    %c0_26 = arith.constant 0 : index
    %c0_27 = arith.constant 0 : index
    %31 = vector.load %arg10[%c0_26, %c0_27] : memref<1x128xf32, #tpu.memory_space<vmem>>, vector<1x128xf32>
    %32 = vector.broadcast %31 : vector<1x128xf32> to vector<2x128xf32>
    %33 = arith.addf %30, %32 : vector<2x128xf32>
    %c0_28 = arith.constant 0 : index
    %c0_29 = arith.constant 0 : index
    %34 = vector.load %arg11[%c0_28, %c0_29] : memref<2x128xf32, #tpu.memory_space<vmem>>, vector<2x128xf32>
    tpu.vector_store %arg11[%c0_28, %c0_29], %33 {strides = array<i32>} : memref<2x128xf32, #tpu.memory_space<vmem>>, vector<2x128xf32>,
    return
  }
}

</mosaic_0001>

<bundles_post_ra>
// kernel: value_network_forward.1
= control target key start
LH: loop header
LB: loop body
LE: loop exit
PB: predicated region body
PF: predicated region fallthrough
CT: control target
= control target key end

     0   :  { %16 = vsyncpa [#allocation3], 0  ;;  %s5082_s0 = inlined_call_operand.hbm [shape: f32[2,32], index: 0, kind: input, shape index: {}]   ;;  %s5083_s1 = inlined_call_operand.vmem [shape: f32[2,1024], index: 1, kind: input, shape index: {}]   ;;  %s5084_s2 = inlined_call_operand.hbm [shape: f32[32,32], index: 2, kind: input, shape index: {}]   ;;  %s5085_s3 = inlined_call_operand.hbm [shape: f32[1,32], index: 3, kind: input, shape index: {}]   ;;  %s5086_s4 = inlined_call_operand.hbm [shape: bf16[1024,640], index: 4, kind: input, shape index: {}]   ;;  %s5087_s5 = inlined_call_operand.hbm [shape: f32[1,640], index: 5, kind: input, shape index: {}]   ;;  %s5088_s6 = inlined_call_operand.hbm [shape: bf16[32,128], index: 6, kind: input, shape index: {}]   ;;  %s5089_s7 = inlined_call_operand.hbm [shape: bf16[640,128], index: 7, kind: input, shape index: {}]   ;;  %s5090_s8 = inlined_call_operand.hbm [shape: f32[1,128], index: 8, kind: input, shape index: {}]   ;;  %s5091_s9 = inlined_call_operand.hbm [shape: f32[128,128], index: 9, kind: input, shape index: {}]   ;;  %s5092_s10 = inlined_call_operand.hbm [shape: f32[1,128], index: 10, kind: input, shape index: {}]   ;;  %s5093_s11 = inlined_call_operand.vmem [shape: f32[2,128], index: 11, kind: output, shape index: {}]  }
   0x1   :  { %17 = vsyncpa [#allocation5], 0 }
   0x2   :  { %18 = vsyncpa [#allocation8], 0 }
   0x3   :  { %19 = vsyncpa [#allocation11], 0 }
   0x4   :  { %20 = vsyncpa [#allocation14], 0 }
   0x5   :  { %21 = vsyncpa [#allocation17], 0  ;;  %s4822_s17 = smov [#allocation4]  }
   0x6   :  { %s39_s18 = sshll.u32 %s4822_s17, 4  ;;  %s40_s18 = int_to_ptr.vmem [resolvable:$true] %s39_s18 }
   0x7   :  { %s4618_s19 = scalar_lea.vmem %s40_s18, 512  ;;  %p4623_p1 = scmp.lt.s32.totalorder %s40_s18, %s40_s18 }
   0x8   :  { %p4619_p0 = scmp.ne.s32.totalorder %s40_s18, %s4618_s19  ;;  %p4624_p2 = scmp.lt.s32.totalorder %s4618_s19, %s4618_s19 }
   0xa   :  { %p4625_p3 = por %p4624_p2, %p4623_p1 }
   0xc   :  { %p4626_p4 = pnand %p4625_p3, %p4619_p0 }
   0xe   :  { %4629 = shalt.err (!%p4626_p4)
}
   0xf   :  { %s4823_s20 = smov 128   ;;  %s4824_s21 = smov 8  }
  0x10   :  { %45 = dma.hbm_to_vmem [thread:$0]  %s5084_s2, 512, %s40_s18, [#allocation5], %s4823_s20, %s4823_s20, %s4824_s21  }
  0x11   :  { %s4825_s24 = smov [#allocation7]  }
  0x12   :  { %s61_s25 = sshll.u32 %s4825_s24, 4  ;;  %s62_s25 = int_to_ptr.vmem [resolvable:$true] %s61_s25 }
  0x13   :  { %s4638_s26 = scalar_lea.vmem %s62_s25, 40960  ;;  %p4643_p6 = scmp.lt.s32.totalorder %s62_s25, %s62_s25 }
  0x14   :  { %p4639_p5 = scmp.ne.s32.totalorder %s62_s25, %s4638_s26  ;;  %p4644_p7 = scmp.lt.s32.totalorder %s4638_s26, %s4638_s26 }
  0x16   :  { %p4645_p8 = por %p4644_p7, %p4643_p6 }
  0x18   :  { %p4646_p9 = pnand %p4645_p8, %p4639_p5 }
  0x1a   :  { %4649 = shalt.err (!%p4646_p9)
}
  0x1b   :  { %s4826_s27 = smov 320   ;;  %s4827_s28 = smov 20  }
  0x1c   :  { %67 = dma.hbm_to_vmem [thread:$0]  %s5086_s4, 40960, %s62_s25, [#allocation8], %s4826_s27, %s4826_s27, %s4827_s28  }
  0x1d   :  { %s4828_s12 = smov [#allocation10]  }
  0x1e   :  { %s83_s13 = sshll.u32 %s4828_s12, 4  ;;  %s84_s13 = int_to_ptr.vmem [resolvable:$true] %s83_s13 }
  0x1f   :  { %s4658_s2 = scalar_lea.vmem %s84_s13, 256  ;;  %p4663_p11 = scmp.lt.s32.totalorder %s84_s13, %s84_s13 }
  0x20   :  { %p4659_p10 = scmp.ne.s32.totalorder %s84_s13, %s4658_s2  ;;  %p4664_p12 = scmp.lt.s32.totalorder %s4658_s2, %s4658_s2 }
  0x22   :  { %p4665_p13 = por %p4664_p12, %p4663_p11 }
  0x24   :  { %p4666_p0 = pnand %p4665_p13, %p4659_p10 }
  0x26   :  { %4669 = shalt.err (!%p4666_p0)
}
  0x27   :  { %s4829_s14 = smov 64   ;;  %s4830_s15 = smov 4  }
  0x28   :  { %89 = dma.hbm_to_vmem [thread:$0]  %s5088_s6, 256, %s84_s13, [#allocation11], %s4829_s14, %s4829_s14, %s4830_s15  }
  0x29   :  { %s4831_s4 = smov [#allocation13]   ;;  %s4832_s19 = smov [#allocation2]  }
  0x2a   :  { %s108_s18 = sshll.u32 %s4831_s4, 4  ;;  %s28_s22 = sshll.u32 %s4832_s19, 4  ;;  %s109_s18 = int_to_ptr.vmem [resolvable:$true] %s108_s18  ;;  %s29_s22 = int_to_ptr.vmem [resolvable:$true] %s28_s22 }
  0x2b   :  { %s4678_s23 = scalar_lea.vmem %s109_s18, 16  ;;  %s4682_s24 = scalar_lea.vmem %s109_s18, 32 }
  0x2c   :  { %p4679_p1 = scmp.ne.s32.totalorder %s109_s18, %s4678_s23  ;;  %p4683_p2 = scmp.lt.s32.totalorder %s109_s18, %s109_s18 }
  0x2d   :  { %p4684_p3 = scmp.lt.s32.totalorder %s4682_s24, %s4678_s23 }
  0x2f   :  { %p4685_p4 = por %p4684_p3, %p4683_p2 }
  0x31   :  { %p4686_p5 = pnand %p4685_p4, %p4679_p1 }
  0x33   :  { %4689 = shalt.err (!%p4686_p5)
}
  0x34   :  { %111 = dma.hbm_to_vmem [thread:$0]  %s5090_s8, 16, %s109_s18, [#allocation14]  }
  0x35   :  { %s4698_s27 = scalar_lea.vmem %s29_s22, 32  ;;  %p4703_p7 = scmp.lt.s32.totalorder %s29_s22, %s29_s22 }
  0x36   :  { %p4699_p6 = scmp.ne.s32.totalorder %s29_s22, %s4698_s27  ;;  %p4704_p8 = scmp.lt.s32.totalorder %s4698_s27, %s4698_s27 }
  0x38   :  { %p4705_p9 = por %p4704_p8, %p4703_p7 }
  0x3a   :  { %p4706_p10 = pnand %p4705_p9, %p4699_p6 }
  0x3c   :  { %4709 = shalt.err (!%p4706_p10)
}
  0x3d   :  { %31 = dma.hbm_to_vmem [thread:$0]  %s5082_s0, 32, %s29_s22, [#allocation3]  }
  0x3e   :  { %s4833_s29 = smov [#allocation6]   ;;  %s4834_s12 = smov [#allocation9]  }
  0x3f   :  { %s52_s30 = sshll.u32 %s4833_s29, 4  ;;  %s74_s13 = sshll.u32 %s4834_s12, 4  ;;  %s53_s30 = int_to_ptr.vmem [resolvable:$true] %s52_s30  ;;  %s75_s13 = int_to_ptr.vmem [resolvable:$true] %s74_s13 }
  0x40   :  { %s4718_s2 = scalar_lea.vmem %s53_s30, 16  ;;  %s4722_s8 = scalar_lea.vmem %s53_s30, 32 }
  0x41   :  { %p4719_p11 = scmp.ne.s32.totalorder %s53_s30, %s4718_s2  ;;  %p4723_p12 = scmp.lt.s32.totalorder %s53_s30, %s53_s30 }
  0x42   :  { %p4724_p13 = scmp.lt.s32.totalorder %s4722_s8, %s4718_s2 }
  0x44   :  { %p4725_p0 = por %p4724_p13, %p4723_p12 }
  0x46   :  { %p4726_p1 = pnand %p4725_p0, %p4719_p11 }
  0x48   :  { %4729 = shalt.err (!%p4726_p1)
}
  0x49   :  { %55 = dma.hbm_to_vmem [thread:$0]  %s5085_s3, 16, %s53_s30, [#allocation5]  }
  0x4a   :  { %s4738_s4 = scalar_lea.vmem %s75_s13, 80  ;;  %s4742_s0 = scalar_lea.vmem %s75_s13, 96 }
  0x4b   :  { %p4739_p2 = scmp.ne.s32.totalorder %s75_s13, %s4738_s4  ;;  %p4743_p3 = scmp.lt.s32.totalorder %s75_s13, %s75_s13 }
  0x4c   :  { %p4744_p4 = scmp.lt.s32.totalorder %s4742_s0, %s4738_s4 }
  0x4e   :  { %p4745_p5 = por %p4744_p4, %p4743_p3 }
  0x50   :  { %p4746_p6 = pnand %p4745_p5, %p4739_p2 }
  0x52   :  { %4749 = shalt.err (!%p4746_p6)
}
  0x53   :  { %77 = dma.hbm_to_vmem [thread:$0]  %s5087_s5, 80, %s75_s13, [#allocation8]  }
  0x54   :  { %s4835_s22 = smov [#allocation12]   ;;  %s4836_s24 = smov [#allocation15]  }
  0x55   :  { %s95_s23 = sshll.u32 %s4835_s22, 4  ;;  %s117_s25 = sshll.u32 %s4836_s24, 4  ;;  %s96_s23 = int_to_ptr.vmem [resolvable:$true] %s95_s23  ;;  %s118_s25 = int_to_ptr.vmem [resolvable:$true] %s117_s25 }
  0x56   :  { %s4758_s26 = scalar_lea.vmem %s96_s23, 5120  ;;  %p4763_p8 = scmp.lt.s32.totalorder %s96_s23, %s96_s23 }
  0x57   :  { %p4759_p7 = scmp.ne.s32.totalorder %s96_s23, %s4758_s26  ;;  %p4764_p9 = scmp.lt.s32.totalorder %s4758_s26, %s4758_s26 }
  0x59   :  { %p4765_p10 = por %p4764_p9, %p4763_p8 }
  0x5b   :  { %p4766_p11 = pnand %p4765_p10, %p4759_p7 }
  0x5d   :  { %4769 = shalt.err (!%p4766_p11)
}
  0x5e   :  { %101 = dma.hbm_to_vmem [thread:$0]  %s5089_s7, 5120, %s96_s23, [#allocation11], %s4829_s14, %s4829_s14, %s4830_s15  }
  0x5f   :  { %s4778_s5 = scalar_lea.vmem %s118_s25, 2048  ;;  %p4783_p13 = scmp.lt.s32.totalorder %s118_s25, %s118_s25 }
  0x60   :  { %p4779_p12 = scmp.ne.s32.totalorder %s118_s25, %s4778_s5  ;;  %p4784_p0 = scmp.lt.s32.totalorder %s4778_s5, %s4778_s5 }
  0x62   :  { %p4785_p1 = por %p4784_p0, %p4783_p13 }
  0x64   :  { %p4786_p2 = pnand %p4785_p1, %p4779_p12 }
  0x66   :  { %4789 = shalt.err (!%p4786_p2)
}
  0x67   :  { %123 = dma.hbm_to_vmem [thread:$0]  %s5091_s9, 2048, %s118_s25, [#allocation14], %s4823_s20, %s4823_s20, %s4824_s21  }
  0x68   :  { %s4837_s29 = smov [#allocation16]  }
  0x69   :  { %s130_s30 = sshll.u32 %s4837_s29, 4  ;;  %s131_s30 = int_to_ptr.vmem [resolvable:$true] %s130_s30 }
  0x6a   :  { %s4798_s12 = scalar_lea.vmem %s131_s30, 16  ;;  %s4802_s7 = scalar_lea.vmem %s131_s30, 32 }
  0x6b   :  { %p4799_p3 = scmp.ne.s32.totalorder %s131_s30, %s4798_s12  ;;  %p4803_p4 = scmp.lt.s32.totalorder %s131_s30, %s131_s30 }
  0x6c   :  { %p4804_p5 = scmp.lt.s32.totalorder %s4802_s7, %s4798_s12 }
  0x6e   :  { %p4805_p6 = por %p4804_p5, %p4803_p4 }
  0x70   :  { %p4806_p7 = pnand %p4805_p6, %p4799_p3 }
  0x72   :  { %4809 = shalt.err (!%p4806_p7)
}
  0x73   :  { %133 = dma.hbm_to_vmem [thread:$0]  %s5092_s10, 16, %s131_s30, [#allocation17]  }
  0x74   :  { %4810 = dma.done.wait [#allocation3], 32  }
  0x75   :  { %4811 = vsyncadd [#allocation3], 4294967264 }
  0x76   :  { %4812 = dma.done.wait [#allocation5], 528  }
  0x77   :  { %4813 = vsyncadd [#allocation5], 4294966768 }
  0x78   :  { %4814 = dma.done.wait [#allocation8], 41040  }
  0x79   :  { %4815 = vsyncadd [#allocation8], 4294926256 }
  0x7a   :  { %4816 = dma.done.wait [#allocation11], 5376  }
  0x7b   :  { %4817 = vsyncadd [#allocation11], 4294961920 }
  0x7c   :  { %4818 = dma.done.wait [#allocation14], 2064  }
  0x7d   :  { %4819 = vsyncadd [#allocation14], 4294965232 }
  0x7e   :  { %4820 = dma.done.wait [#allocation17], 16  }
  0x7f   :  { %4821 = vsyncadd [#allocation17], 4294967280  ;;  %v4838_v0 = vmov 0.0   ;;  %vm4839_vm0 = vmmov 0   ;;  %v169_v1 = vld [vmem:[#allocation4 + $0x18] sm:$0xff]  ;;  %v168_v2 = vld [vmem:[#allocation4 + $0x10] sm:$0xff]  ;;  %v260_v44 = vlaneseq }
  0x80   :  { %4025 = vmatprep.subr.mxu1 %v4838_v0  ;;  %4033 = vmatprep.mubr.msk.f32.mxu1 %vm4839_vm0, %v4838_v0  ;;  %v4118_v3 = vld [vmem:[#allocation7 + $0x39c] ss:$20 sps:$4 sm:$0xff]   ;;  %v167_v4 = vld [vmem:[#allocation4 + $0x8] sm:$0xff]  ;;  %vm177_vm1 = vcmask 261120   ;;  %v4138_v19 = vld [vmem:[#allocation7 + $0x320] ss:$20 sps:$4 sm:$0xff]  }
  0x81   :  { %4026 = vmatpush3.msra.mxu1 %v169_v1  ;;  %v4120_v5 = vld [vmem:[#allocation7 + $0x398] ss:$20 sps:$4 sm:$0xff]   ;;  %v166_v6 = vld [vmem:[#allocation4] sm:$0xff]  ;;  %2422 = vmatprep.subr.bf16.mxu0 %v4118_v3  ;;  %v165_v7 = vld [vmem:[#allocation2] sm:$0x3]  ;;  %v4950_v50 = vshrl.u32 %v260_v44, 7 }
  0x82   :  { %4027 = vmatprep.subr.mxu1 %v4838_v0  ;;  %v4121_v8 = vld [vmem:[#allocation7 + $0x118] ss:$20 sps:$4 sm:$0xff]   ;;  %2423 = vmatpush1.bf16.msra.mxu0 %v4120_v5  ;;  %v4123_v9 = vld [vmem:[#allocation7 + $0x11c] ss:$20 sps:$4 sm:$0xff]   ;;  %v4124_v10 = vld [vmem:[#allocation7 + $0x374] ss:$20 sps:$4 sm:$0xff]  }
  0x83   :  { %4028 = vmatpush3.msra.mxu1 %v168_v2  ;;  %v4126_v11 = vld [vmem:[#allocation7 + $0x370] ss:$20 sps:$4 sm:$0xff]   ;;  %v4129_v12 = vld [vmem:[#allocation7 + $0xf4] ss:$20 sps:$4 sm:$0xff]   ;;  %2424 = vmatprep.subr.bf16.mxu0 %v4124_v10  ;;  %v4130_v13 = vld [vmem:[#allocation7 + $0x34c] ss:$20 sps:$4 sm:$0xff]  }
  0x84   :  { %4029 = vmatprep.subr.mxu1 %v4838_v0  ;;  %v4127_v14 = vld [vmem:[#allocation7 + $0xf0] ss:$20 sps:$4 sm:$0xff]   ;;  %v4132_v15 = vld [vmem:[#allocation7 + $0x348] ss:$20 sps:$4 sm:$0xff]   ;;  %v4135_v16 = vld [vmem:[#allocation7 + $0xcc] ss:$20 sps:$4 sm:$0xff]  }
  0x85   :  { %4030 = vmatpush3.msra.mxu1 %v167_v4  ;;  %v4136_v17 = vld [vmem:[#allocation7 + $0x324] ss:$20 sps:$4 sm:$0xff]   ;;  %v4133_v18 = vld [vmem:[#allocation7 + $0xc8] ss:$20 sps:$4 sm:$0xff]   ;;  %v4139_v22 = vld [vmem:[#allocation7 + $0xa0] ss:$20 sps:$4 sm:$0xff]  }
  0x86   :  { %4031 = vmatprep.subr.mxu1 %v4838_v0  ;;  %2425 = vmatpush1.bf16.msra.mxu0 %v4126_v11  ;;  %v4141_v20 = vld [vmem:[#allocation7 + $0xa4] ss:$20 sps:$4 sm:$0xff]   ;;  %v4142_v21 = vld [vmem:[#allocation7 + $0x2fc] ss:$20 sps:$4 sm:$0xff]   ;;  %v4148_v25 = vld [vmem:[#allocation7 + $0x2d4] ss:$20 sps:$4 sm:$0xff]  }
  0x87   :  { %4032 = vmatpush3.msra.mxu1 %v166_v6  ;;  %2426 = vmatprep.subr.bf16.mxu0 %v4130_v13  ;;  %v4144_v23 = vld [vmem:[#allocation7 + $0x2f8] ss:$20 sps:$4 sm:$0xff]   ;;  %v4147_v24 = vld [vmem:[#allocation7 + $0x7c] ss:$20 sps:$4 sm:$0xff]   ;;  %v4153_v28 = vld [vmem:[#allocation7 + $0x54] ss:$20 sps:$4 sm:$0xff]  }
  0x88   :  { %4034 = vmatmul.mubr.msk.f32.vlgmr.msra.gmra.mxu1 %vm177_vm1, %v165_v7  ;;  %2381 = vmatprep.subr.bf16.mxu1 %v4123_v9  ;;  %v4145_v26 = vld [vmem:[#allocation7 + $0x78] ss:$20 sps:$4 sm:$0xff]   ;;  %v4150_v27 = vld [vmem:[#allocation7 + $0x2d0] ss:$20 sps:$4 sm:$0xff]   ;;  %v4156_v31 = vld [vmem:[#allocation7 + $0x2a8] ss:$20 sps:$4 sm:$0xff]  }
  0x89   :  { %2382 = vmatpush1.bf16.msra.mxu1 %v4121_v8  ;;  %v4154_v29 = vld [vmem:[#allocation7 + $0x2ac] ss:$20 sps:$4 sm:$0xff]   ;;  %v4151_v30 = vld [vmem:[#allocation7 + $0x50] ss:$20 sps:$4 sm:$0xff]   ;;  %v4157_v34 = vld [vmem:[#allocation7 + $0x28] ss:$20 sps:$4 sm:$0xff]  }
  0x8a   :  { %2383 = vmatprep.subr.bf16.mxu1 %v4129_v12  ;;  %2427 = vmatpush1.bf16.msra.mxu0 %v4132_v15  ;;  %v4159_v32 = vld [vmem:[#allocation7 + $0x2c] ss:$20 sps:$4 sm:$0xff]   ;;  %v4160_v33 = vld [vmem:[#allocation7 + $0x284] ss:$20 sps:$4 sm:$0xff]   ;;  %v4166_v37 = vld [vmem:[#allocation7 + $0x4dc] ss:$20 sps:$4 sm:$0xff]  }
  0x8b   :  { %2428 = vmatprep.subr.bf16.mxu0 %v4136_v17  ;;  %v4162_v35 = vld [vmem:[#allocation7 + $0x280] ss:$20 sps:$4 sm:$0xff]   ;;  %v4165_v36 = vld [vmem:[#allocation7 + $0x4] ss:$20 sps:$4 sm:$0xff]   ;;  %v4171_v40 = vld [vmem:[#allocation7 + $0x25c] ss:$20 sps:$4 sm:$0xff]  }
  0x8c   :  { %v4163_v38 = vld [vmem:[#allocation7] ss:$20 sps:$4 sm:$0xff]   ;;  %v4168_v39 = vld [vmem:[#allocation7 + $0x4d8] ss:$20 sps:$4 sm:$0xff]   ;;  %v4840_v42 = vmov 1983009808  }
  0x8d   :  { %2384 = vmatpush1.bf16.msra.mxu1 %v4127_v14  ;;  %v4172_v41 = vld [vmem:[#allocation7 + $0x4b4] ss:$20 sps:$4 sm:$0xff]   ;;  %v258_v43 = vunpack.c.l.s4 %v4840_v42  ;;  %v4169_v45 = vld [vmem:[#allocation7 + $0x258] ss:$20 sps:$4 sm:$0xff]   ;;  %v4174_v46 = vld [vmem:[#allocation7 + $0x4b0] ss:$20 sps:$4 sm:$0xff]  }
  0x8e   :  { %2385 = vmatprep.subr.bf16.mxu1 %v4135_v16  ;;  %2429 = vmatpush1.bf16.msra.mxu0 %v4138_v19  ;;  %v4177_v47 = vld [vmem:[#allocation7 + $0x234] ss:$20 sps:$4 sm:$0xff]   ;;  %v4178_v48 = vld [vmem:[#allocation7 + $0x48c] ss:$20 sps:$4 sm:$0xff]   ;;  %v4175_v51 = vld [vmem:[#allocation7 + $0x230] ss:$20 sps:$4 sm:$0xff]  }
  0x8f   :  { %2430 = vmatprep.subr.bf16.mxu0 %v4142_v21  ;;  %v259_v49 = vunpack.c.0.s8 %v258_v43  ;;  %v4180_v52 = vld [vmem:[#allocation7 + $0x488] ss:$20 sps:$4 sm:$0xff]   ;;  %v4183_v53 = vld [vmem:[#allocation7 + $0x20c] ss:$20 sps:$4 sm:$0xff]   ;;  %v4184_v54 = vld [vmem:[#allocation7 + $0x464] ss:$20 sps:$4 sm:$0xff]  }
  0x90   :  { %v4181_v56 = vld [vmem:[#allocation7 + $0x208] ss:$20 sps:$4 sm:$0xff]   ;;  %v4186_v58 = vld [vmem:[#allocation7 + $0x460] ss:$20 sps:$4 sm:$0xff]   ;;  %v4189_v59 = vld [vmem:[#allocation7 + $0x1e4] ss:$20 sps:$4 sm:$0xff]  }
  0x91   :  { %2386 = vmatpush1.bf16.msra.mxu1 %v4133_v18  ;;  %v4953_v55 = vsub.s32 %v259_v49, %v4950_v50  ;;  %v252_v57 = vld [vmem:[%s5083_s1] sm:$0xff]  ;;  %v4192_v3 = vld [vmem:[#allocation7 + $0x438] ss:$20 sps:$4 sm:$0xff]   ;;  %v4196_v7 = vld [vmem:[#allocation7 + $0x414] ss:$20 sps:$4 sm:$0xff]  }
  0x92   :  { %2387 = vmatprep.subr.bf16.mxu1 %v4141_v20  ;;  %2431 = vmatpush1.bf16.msra.mxu0 %v4144_v23  ;;  %v256_v60 = vcombine.high %v252_v57, %v252_v57  ;;  %v4190_v62 = vld [vmem:[#allocation7 + $0x43c] ss:$20 sps:$4 sm:$0xff]   ;;  %v4187_v2 = vld [vmem:[#allocation7 + $0x1e0] ss:$20 sps:$4 sm:$0xff]   ;;  %v4193_v9 = vld [vmem:[#allocation7 + $0x1b8] ss:$20 sps:$4 sm:$0xff]  }
  0x93   :  { %2432 = vmatprep.subr.bf16.mxu0 %v4148_v25  ;;  %v263_v61 = vrot.slane %v252_v57, %v4953_v55  ;;  %v4195_v4 = vld [vmem:[#allocation7 + $0x1bc] ss:$20 sps:$4 sm:$0xff]   ;;  %v4201_v11 = vld [vmem:[#allocation7 + $0x194] ss:$20 sps:$4 sm:$0xff]   ;;  %v4202_v12 = vld [vmem:[#allocation7 + $0x3ec] ss:$20 sps:$4 sm:$0xff]  }
  0x94   :  { %v270_v63 = vrot.slane %v256_v60, %v4953_v55  ;;  %v4198_v10 = vld [vmem:[#allocation7 + $0x410] ss:$20 sps:$4 sm:$0xff]   ;;  %v4204_v14 = vld [vmem:[#allocation7 + $0x3e8] ss:$20 sps:$4 sm:$0xff]   ;;  %v4207_v15 = vld [vmem:[#allocation7 + $0x16c] ss:$20 sps:$4 sm:$0xff]  }
  0x95   :  { %2388 = vmatpush1.bf16.msra.mxu1 %v4139_v22  ;;  %v271_v1 = vcombine.high %v263_v61, %v263_v61  ;;  %v4199_v13 = vld [vmem:[#allocation7 + $0x190] ss:$20 sps:$4 sm:$0xff]   ;;  %v4205_v17 = vld [vmem:[#allocation7 + $0x168] ss:$20 sps:$4 sm:$0xff]   ;;  %v4210_v18 = vld [vmem:[#allocation7 + $0x3c0] ss:$20 sps:$4 sm:$0xff]  }
  0x96   :  { %2389 = vmatprep.subr.bf16.mxu1 %v4147_v24  ;;  %2433 = vmatpush1.bf16.msra.mxu0 %v4150_v27  ;;  %v272_v5 = vcombine.high %v270_v63, %v270_v63  ;;  %v4208_v16 = vld [vmem:[#allocation7 + $0x3c4] ss:$20 sps:$4 sm:$0xff]   ;;  %v4217_v20 = vld [vmem:[#allocation7 + $0x89c] ss:$20 sps:$4 sm:$0xff]   ;;  %v4211_v21 = vld [vmem:[#allocation7 + $0x140] ss:$20 sps:$4 sm:$0xff]   ;;  %v4966_v22 = vpack.c.bf16 %v270_v63, %v270_v63 }
  0x97   :  { %2434 = vmatprep.subr.bf16.mxu0 %v4154_v29  ;;  %v4960_v6 = vpack.c.bf16 %v271_v1, %v271_v1  ;;  %v4213_v19 = vld [vmem:[#allocation7 + $0x144] ss:$20 sps:$4 sm:$0xff]   ;;  %v4220_v24 = vld [vmem:[#allocation7 + $0x61c] ss:$20 sps:$4 sm:$0xff]   ;;  %v4223_v25 = vld [vmem:[#allocation7 + $0x874] ss:$20 sps:$4 sm:$0xff]  }
  0x98   :  { %v4962_v8 = vpack.c.bf16 %v272_v5, %v272_v5  ;;  %v4215_v23 = vld [vmem:[#allocation7 + $0x898] ss:$20 sps:$4 sm:$0xff]   ;;  %v4226_v29 = vld [vmem:[#allocation7 + $0x5f4] ss:$20 sps:$4 sm:$0xff]   ;;  %v4245_v44 = vld [vmem:[#allocation7 + $0x7d0] ss:$20 sps:$4 sm:$0xff]  }
  0x99   :  { %2390 = vmatpush1.bf16.msra.mxu1 %v4145_v26  ;;  %2413 = vmatprep.mubr.bf16.mxu1 %v4960_v6  ;;  %v4969_v26 = vpack.c.bf16 %v263_v61, %v263_v61  ;;  %v4218_v27 = vld [vmem:[#allocation7 + $0x618] ss:$20 sps:$4 sm:$0xff]   ;;  %v4247_v42 = vld [vmem:[#allocation7 + $0x7d4] ss:$20 sps:$4 sm:$0xff]   ;;  %v4265_v63 = vld [vmem:[#allocation7 + $0x9dc] ss:$20 sps:$4 sm:$0xff]  }
  0x9a   :  { %2391 = vmatprep.subr.bf16.mxu1 %v4153_v28  ;;  %2435 = vmatpush1.bf16.msra.mxu0 %v4156_v31  ;;  %v4221_v28 = vld [vmem:[#allocation7 + $0x870] ss:$20 sps:$4 sm:$0xff]   ;;  %v4242_v43 = vld [vmem:[#allocation7 + $0x578] ss:$20 sps:$4 sm:$0xff]   ;;  %v4251_v49 = vld [vmem:[#allocation7 + $0x7a8] ss:$20 sps:$4 sm:$0xff]  }
  0x9b   :  { %2436 = vmatprep.subr.bf16.mxu0 %v4160_v33  ;;  %2454 = vmatprep.mubr.bf16.mxu0 %v4962_v8  ;;  %v4224_v31 = vld [vmem:[#allocation7 + $0x5f0] ss:$20 sps:$4 sm:$0xff]   ;;  %v4232_v33 = vld [vmem:[#allocation7 + $0x5cc] ss:$20 sps:$4 sm:$0xff]  }
  0x9c   :  { %v4266_v5 = vld [vmem:[#allocation7 + $0x758] ss:$20 sps:$4 sm:$0xff]  }
  0x9d   :  { %2392 = vmatpush1.bf16.msra.mxu1 %v4151_v30  ;;  %v4229_v30 = vld [vmem:[#allocation7 + $0x84c] ss:$20 sps:$4 sm:$0xff]  }
  0x9e   :  { %2393 = vmatprep.subr.bf16.mxu1 %v4159_v32  ;;  %2437 = vmatpush1.bf16.msra.mxu0 %v4162_v35  ;;  %v4227_v32 = vld [vmem:[#allocation7 + $0x848] ss:$20 sps:$4 sm:$0xff]  }
  0x9f   :  { %2438 = vmatprep.subr.bf16.mxu0 %v4166_v37  ;;  %v4230_v35 = vld [vmem:[#allocation7 + $0x5c8] ss:$20 sps:$4 sm:$0xff]   ;;  %v4238_v37 = vld [vmem:[#allocation7 + $0x5a4] ss:$20 sps:$4 sm:$0xff]  }
  0xa1   :  { %2394 = vmatpush1.bf16.msra.mxu1 %v4157_v34  ;;  %v4235_v34 = vld [vmem:[#allocation7 + $0x824] ss:$20 sps:$4 sm:$0xff]  }
  0xa2   :  { %2395 = vmatprep.subr.bf16.mxu1 %v4165_v36  ;;  %2439 = vmatpush2.bf16.msra.mxu0 %v4168_v39  ;;  %v4233_v36 = vld [vmem:[#allocation7 + $0x820] ss:$20 sps:$4 sm:$0xff]  }
  0xa3   :  { %2440 = vmatprep.subr.bf16.mxu0 %v4172_v41  ;;  %v4236_v39 = vld [vmem:[#allocation7 + $0x5a0] ss:$20 sps:$4 sm:$0xff]   ;;  %v4244_v41 = vld [vmem:[#allocation7 + $0x57c] ss:$20 sps:$4 sm:$0xff]  }
  0xa5   :  { %2396 = vmatpush1.bf16.msra.mxu1 %v4163_v38  ;;  %v4241_v38 = vld [vmem:[#allocation7 + $0x7fc] ss:$20 sps:$4 sm:$0xff]  }
  0xa6   :  { %2397 = vmatprep.subr.bf16.mxu1 %v4171_v40  ;;  %2441 = vmatpush2.bf16.msra.mxu0 %v4174_v46  ;;  %v4239_v40 = vld [vmem:[#allocation7 + $0x7f8] ss:$20 sps:$4 sm:$0xff]  }
  0xa7   :  { %2442 = vmatprep.subr.bf16.mxu0 %v4178_v48  ;;  %v4253_v46 = vld [vmem:[#allocation7 + $0x7ac] ss:$20 sps:$4 sm:$0xff]   ;;  %v4248_v48 = vld [vmem:[#allocation7 + $0x550] ss:$20 sps:$4 sm:$0xff]  }
  0xa9   :  { %2398 = vmatpush2.bf16.msra.mxu1 %v4169_v45  ;;  %v4250_v45 = vld [vmem:[#allocation7 + $0x554] ss:$20 sps:$4 sm:$0xff]  }
  0xaa   :  { %2399 = vmatprep.subr.bf16.mxu1 %v4177_v47  ;;  %2443 = vmatpush2.bf16.msra.mxu0 %v4180_v52  ;;  %v253_v47 = vld [vmem:[%s5083_s1 + $0x8] sm:$0xff] }
  0xab   :  { %2444 = vmatprep.subr.bf16.mxu0 %v4184_v54  ;;  %v4976_v52 = vrot.slane %v253_v47, %v4953_v55  ;;  %v4259_v54 = vld [vmem:[#allocation7 + $0x784] ss:$20 sps:$4 sm:$0xff]  }
  0xad   :  { %2400 = vmatpush2.bf16.msra.mxu1 %v4175_v51  ;;  %v273_v51 = vcombine.high %v253_v47, %v253_v47  ;;  %v288_v57 = vcombine.high %v4976_v52, %v4976_v52  ;;  %v4321_v47 = vld [vmem:[#allocation7 + $0xf8] ss:$20 sps:$4 sm:$0xff]  }
  0xae   :  { %2401 = vmatprep.subr.bf16.mxu1 %v4183_v53  ;;  %2445 = vmatpush2.bf16.msra.mxu0 %v4186_v58  ;;  %v4256_v53 = vld [vmem:[#allocation7 + $0x52c] ss:$20 sps:$4 sm:$0xff]   ;;  %v4254_v58 = vld [vmem:[#allocation7 + $0x528] ss:$20 sps:$4 sm:$0xff]  }
  0xaf   :  { %2446 = vmatprep.subr.bf16.mxu0 %v4190_v62  ;;  %v4985_v61 = vpack.c.bf16 %v288_v57, %v288_v57  ;;  %v4262_v62 = vld [vmem:[#allocation7 + $0x504] ss:$20 sps:$4 sm:$0xff]   ;;  %v4333_v57 = vld [vmem:[#allocation7 + $0xa8] ss:$20 sps:$4 sm:$0xff]  }
  0xb1   :  { %2402 = vmatpush2.bf16.msra.mxu1 %v4181_v56  ;;  %v4979_v56 = vrot.slane %v273_v51, %v4953_v55  ;;  %v4260_v55 = vld [vmem:[#allocation7 + $0x500] ss:$20 sps:$4 sm:$0xff]  }
  0xb2   :  { %2403 = vmatprep.subr.bf16.mxu1 %v4189_v59  ;;  %2447 = vmatpush2.bf16.msra.mxu0 %v4192_v3  ;;  %v4257_v59 = vld [vmem:[#allocation7 + $0x780] ss:$20 sps:$4 sm:$0xff]   ;;  %v4268_v3 = vld [vmem:[#allocation7 + $0x75c] ss:$20 sps:$4 sm:$0xff]  }
  0xb3   :  { %2448 = vmatprep.subr.bf16.mxu0 %v4196_v7  ;;  %v289_v60 = vcombine.high %v4979_v56, %v4979_v56  ;;  %v4269_v7 = vld [vmem:[#allocation7 + $0x9b0] ss:$20 sps:$4 sm:$0xff]   ;;  %v4332_v51 = vld [vmem:[#allocation7 + $0x32c] ss:$20 sps:$4 sm:$0xff]  }
  0xb5   :  { %2404 = vmatpush2.bf16.msra.mxu1 %v4187_v2  ;;  %v4987_v1 = vpack.c.bf16 %v289_v60, %v289_v60  ;;  %v4263_v2 = vld [vmem:[#allocation7 + $0x9d8] ss:$20 sps:$4 sm:$0xff]   ;;  %v4344_v60 = vld [vmem:[#allocation7 + $0x2dc] ss:$20 sps:$4 sm:$0xff]  }
  0xb6   :  { %2405 = vmatprep.subr.bf16.mxu1 %v4195_v4  ;;  %2449 = vmatpush2.bf16.msra.mxu0 %v4198_v10  ;;  %v4271_v4 = vld [vmem:[#allocation7 + $0x9b4] ss:$20 sps:$4 sm:$0xff]   ;;  %v4277_v10 = vld [vmem:[#allocation7 + $0x98c] ss:$20 sps:$4 sm:$0xff]  }
  0xb7   :  { %2450 = vmatprep.subr.bf16.mxu0 %v4202_v12  ;;  %v4275_v12 = vld [vmem:[#allocation7 + $0x988] ss:$20 sps:$4 sm:$0xff]  }
  0xb9   :  { %2406 = vmatpush2.bf16.msra.mxu1 %v4193_v9  ;;  %v4274_v9 = vld [vmem:[#allocation7 + $0x734] ss:$20 sps:$4 sm:$0xff]  }
  0xba   :  { %2407 = vmatprep.subr.bf16.mxu1 %v4201_v11  ;;  %2451 = vmatpush2.bf16.msra.mxu0 %v4204_v14  ;;  %v4272_v11 = vld [vmem:[#allocation7 + $0x730] ss:$20 sps:$4 sm:$0xff]  }
  0xbb   :  { %2452 = vmatprep.subr.bf16.mxu0 %v4208_v16  ;;  %v4283_v14 = vld [vmem:[#allocation7 + $0x964] ss:$20 sps:$4 sm:$0xff]   ;;  %v4281_v16 = vld [vmem:[#allocation7 + $0x960] ss:$20 sps:$4 sm:$0xff]  }
  0xbd   :  { %2408 = vmatpush2.bf16.msra.mxu1 %v4199_v13  ;;  %v4280_v13 = vld [vmem:[#allocation7 + $0x70c] ss:$20 sps:$4 sm:$0xff]  }
  0xbe   :  { %2409 = vmatprep.subr.bf16.mxu1 %v4207_v15  ;;  %2453 = vmatpush2.bf16.msra.mxu0 %v4210_v18  ;;  %v4278_v15 = vld [vmem:[#allocation7 + $0x708] ss:$20 sps:$4 sm:$0xff]  }
  0xbf   :  { %2504 = vmatprep.subr.bf16.mxu0 %v4217_v20  ;;  %v4289_v18 = vld [vmem:[#allocation7 + $0x93c] ss:$20 sps:$4 sm:$0xff]   ;;  %v4287_v20 = vld [vmem:[#allocation7 + $0x938] ss:$20 sps:$4 sm:$0xff]  }
  0xc1   :  { %2410 = vmatpush2.bf16.msra.mxu1 %v4205_v17  ;;  %2455 = vmatmul.mubr.bf16.vlgmr.msra.gmra.mxu0 %v4966_v22  ;;  %v4286_v17 = vld [vmem:[#allocation7 + $0x6e4] ss:$20 sps:$4 sm:$0xff]  }
  0xc2   :  { %2411 = vmatprep.subr.bf16.mxu1 %v4213_v19  ;;  %2505 = vmatpush1.bf16.msra.mxu0 %v4215_v23  ;;  %v4284_v19 = vld [vmem:[#allocation7 + $0x6e0] ss:$20 sps:$4 sm:$0xff]  }
  0xc3   :  { %2506 = vmatprep.subr.bf16.mxu0 %v4223_v25  ;;  %2536 = vmatprep.mubr.bf16.mxu0 %v4987_v1  ;;  %v4295_v23 = vld [vmem:[#allocation7 + $0x914] ss:$20 sps:$4 sm:$0xff]   ;;  %v4293_v25 = vld [vmem:[#allocation7 + $0x910] ss:$20 sps:$4 sm:$0xff]  }
  0xc5   :  { %2412 = vmatpush2.bf16.msra.mxu1 %v4211_v21  ;;  %v4292_v21 = vld [vmem:[#allocation7 + $0x6bc] ss:$20 sps:$4 sm:$0xff]  }
  0xc6   :  { %2463 = vmatprep.subr.bf16.mxu1 %v4220_v24  ;;  %2507 = vmatpush1.bf16.msra.mxu0 %v4221_v28  ;;  %v4290_v24 = vld [vmem:[#allocation7 + $0x6b8] ss:$20 sps:$4 sm:$0xff]  }
  0xc7   :  { %2508 = vmatprep.subr.bf16.mxu0 %v4229_v30  ;;  %v4301_v28 = vld [vmem:[#allocation7 + $0x8ec] ss:$20 sps:$4 sm:$0xff]   ;;  %v4299_v30 = vld [vmem:[#allocation7 + $0x8e8] ss:$20 sps:$4 sm:$0xff]  }
  0xc8   :  { %2414 = vmatmul.mubr.bf16.vlgmr.msra.gmra.mxu1 %v4969_v26 }
  0xc9   :  { %2464 = vmatpush1.bf16.msra.mxu1 %v4218_v27  ;;  %2495 = vmatprep.mubr.bf16.mxu1 %v4985_v61  ;;  %v4298_v27 = vld [vmem:[#allocation7 + $0x694] ss:$20 sps:$4 sm:$0xff]  }
  0xca   :  { %2465 = vmatprep.subr.bf16.mxu1 %v4226_v29  ;;  %2509 = vmatpush1.bf16.msra.mxu0 %v4227_v32  ;;  %v4296_v29 = vld [vmem:[#allocation7 + $0x690] ss:$20 sps:$4 sm:$0xff]  }
  0xcb   :  { %2510 = vmatprep.subr.bf16.mxu0 %v4235_v34  ;;  %v4307_v32 = vld [vmem:[#allocation7 + $0x8c4] ss:$20 sps:$4 sm:$0xff]   ;;  %v4305_v34 = vld [vmem:[#allocation7 + $0x8c0] ss:$20 sps:$4 sm:$0xff]  }
  0xcd   :  { %2466 = vmatpush1.bf16.msra.mxu1 %v4224_v31  ;;  %v4304_v31 = vld [vmem:[#allocation7 + $0x66c] ss:$20 sps:$4 sm:$0xff]  }
  0xce   :  { %2467 = vmatprep.subr.bf16.mxu1 %v4232_v33  ;;  %2511 = vmatpush1.bf16.msra.mxu0 %v4233_v36  ;;  %v4302_v33 = vld [vmem:[#allocation7 + $0x668] ss:$20 sps:$4 sm:$0xff]   ;;  %v4314_v36 = vld [vmem:[#allocation7 + $0x3a4] ss:$20 sps:$4 sm:$0xff]  }
  0xcf   :  { %2512 = vmatprep.subr.bf16.mxu0 %v4241_v38  ;;  %v4312_v38 = vld [vmem:[#allocation7 + $0x3a0] ss:$20 sps:$4 sm:$0xff]  }
  0xd1   :  { %2468 = vmatpush1.bf16.msra.mxu1 %v4230_v35  ;;  %v4310_v35 = vld [vmem:[#allocation7 + $0x644] ss:$20 sps:$4 sm:$0xff]  }
  0xd2   :  { %2469 = vmatprep.subr.bf16.mxu1 %v4238_v37  ;;  %2513 = vmatpush1.bf16.msra.mxu0 %v4239_v40  ;;  %v4308_v37 = vld [vmem:[#allocation7 + $0x640] ss:$20 sps:$4 sm:$0xff]   ;;  %v4317_v40 = vld [vmem:[#allocation7 + $0x124] ss:$20 sps:$4 sm:$0xff]  }
  0xd3   :  { %2514 = vmatprep.subr.bf16.mxu0 %v4247_v42  ;;  %v4998_v42 = vpack.c.bf16 %v4976_v52, %v4976_v52  ;;  %v4327_v52 = vld [vmem:[#allocation7 + $0xd0] ss:$20 sps:$4 sm:$0xff]  }
  0xd5   :  { %2470 = vmatpush1.bf16.msra.mxu1 %v4236_v39  ;;  %v4993_v39 = vpack.c.bf16 %v4979_v56, %v4979_v56  ;;  %v4338_v56 = vld [vmem:[#allocation7 + $0x304] ss:$20 sps:$4 sm:$0xff]  }
  0xd6   :  { %2471 = vmatprep.subr.bf16.mxu1 %v4244_v41  ;;  %2515 = vmatpush1.bf16.msra.mxu0 %v4245_v44  ;;  %v4320_v41 = vld [vmem:[#allocation7 + $0x37c] ss:$20 sps:$4 sm:$0xff]   ;;  %v4318_v44 = vld [vmem:[#allocation7 + $0x378] ss:$20 sps:$4 sm:$0xff]  }
  0xd7   :  { %2516 = vmatprep.subr.bf16.mxu0 %v4253_v46  ;;  %v4326_v46 = vld [vmem:[#allocation7 + $0x354] ss:$20 sps:$4 sm:$0xff]  }
  0xd9   :  { %2472 = vmatpush1.bf16.msra.mxu1 %v4242_v43  ;;  %v4315_v43 = vld [vmem:[#allocation7 + $0x120] ss:$20 sps:$4 sm:$0xff]  }
  0xda   :  { %2473 = vmatprep.subr.bf16.mxu1 %v4250_v45  ;;  %2517 = vmatpush1.bf16.msra.mxu0 %v4251_v49  ;;  %v4323_v45 = vld [vmem:[#allocation7 + $0xfc] ss:$20 sps:$4 sm:$0xff]   ;;  %v4329_v49 = vld [vmem:[#allocation7 + $0xd4] ss:$20 sps:$4 sm:$0xff]  }
  0xdb   :  { %2518 = vmatprep.subr.bf16.mxu0 %v4259_v54  ;;  %v4335_v54 = vld [vmem:[#allocation7 + $0xac] ss:$20 sps:$4 sm:$0xff]  }
  0xdd   :  { %2474 = vmatpush1.bf16.msra.mxu1 %v4248_v48  ;;  %v4324_v48 = vld [vmem:[#allocation7 + $0x350] ss:$20 sps:$4 sm:$0xff]  }
  0xde   :  { %2475 = vmatprep.subr.bf16.mxu1 %v4256_v53  ;;  %2519 = vmatpush1.bf16.msra.mxu0 %v4257_v59  ;;  %v4330_v53 = vld [vmem:[#allocation7 + $0x328] ss:$20 sps:$4 sm:$0xff]   ;;  %v4341_v59 = vld [vmem:[#allocation7 + $0x84] ss:$20 sps:$4 sm:$0xff]  }
  0xdf   :  { %2520 = vmatprep.subr.bf16.mxu0 %v4265_v63  ;;  %v4342_v63 = vld [vmem:[#allocation7 + $0x2d8] ss:$20 sps:$4 sm:$0xff]  }
  0xe1   :  { %2476 = vmatpush1.bf16.msra.mxu1 %v4254_v58  ;;  %v4336_v58 = vld [vmem:[#allocation7 + $0x300] ss:$20 sps:$4 sm:$0xff]  }
  0xe2   :  { %2477 = vmatprep.subr.bf16.mxu1 %v4262_v62  ;;  %2521 = vmatpush2.bf16.msra.mxu0 %v4263_v2  ;;  %v4339_v62 = vld [vmem:[#allocation7 + $0x80] ss:$20 sps:$4 sm:$0xff]  }
  0xe3   :  { %2522 = vmatprep.subr.bf16.mxu0 %v4271_v4  ;;  %v4350_v2 = vld [vmem:[#allocation7 + $0x2b4] ss:$20 sps:$4 sm:$0xff]   ;;  %v4348_v4 = vld [vmem:[#allocation7 + $0x2b0] ss:$20 sps:$4 sm:$0xff]  }
  0xe5   :  { %2478 = vmatpush1.bf16.msra.mxu1 %v4260_v55  ;;  %v4347_v55 = vld [vmem:[#allocation7 + $0x5c] ss:$20 sps:$4 sm:$0xff]  }
  0xe6   :  { %2479 = vmatprep.subr.bf16.mxu1 %v4268_v3  ;;  %2523 = vmatpush2.bf16.msra.mxu0 %v4269_v7  ;;  %v4345_v3 = vld [vmem:[#allocation7 + $0x58] ss:$20 sps:$4 sm:$0xff]  }
  0xe7   :  { %2524 = vmatprep.subr.bf16.mxu0 %v4277_v10  ;;  %v4356_v7 = vld [vmem:[#allocation7 + $0x28c] ss:$20 sps:$4 sm:$0xff]   ;;  %v4354_v10 = vld [vmem:[#allocation7 + $0x288] ss:$20 sps:$4 sm:$0xff]  }
  0xe9   :  { %2480 = vmatpush2.bf16.msra.mxu1 %v4266_v5  ;;  %v4353_v5 = vld [vmem:[#allocation7 + $0x34] ss:$20 sps:$4 sm:$0xff]  }
  0xea   :  { %2481 = vmatprep.subr.bf16.mxu1 %v4274_v9  ;;  %2525 = vmatpush2.bf16.msra.mxu0 %v4275_v12  ;;  %v4351_v9 = vld [vmem:[#allocation7 + $0x30] ss:$20 sps:$4 sm:$0xff]  }
  0xeb   :  { %2526 = vmatprep.subr.bf16.mxu0 %v4283_v14  ;;  %v4362_v12 = vld [vmem:[#allocation7 + $0x4e4] ss:$20 sps:$4 sm:$0xff]   ;;  %v4360_v14 = vld [vmem:[#allocation7 + $0x4e0] ss:$20 sps:$4 sm:$0xff]  }
  0xed   :  { %2482 = vmatpush2.bf16.msra.mxu1 %v4272_v11  ;;  %v4359_v11 = vld [vmem:[#allocation7 + $0xc] ss:$20 sps:$4 sm:$0xff]  }
  0xee   :  { %2483 = vmatprep.subr.bf16.mxu1 %v4280_v13  ;;  %2527 = vmatpush2.bf16.msra.mxu0 %v4281_v16  ;;  %v4357_v13 = vld [vmem:[#allocation7 + $0x8] ss:$20 sps:$4 sm:$0xff]  }
  0xef   :  { %2528 = vmatprep.subr.bf16.mxu0 %v4289_v18  ;;  %v4368_v16 = vld [vmem:[#allocation7 + $0x4bc] ss:$20 sps:$4 sm:$0xff]   ;;  %v4366_v18 = vld [vmem:[#allocation7 + $0x4b8] ss:$20 sps:$4 sm:$0xff]  }
  0xf1   :  { %2484 = vmatpush2.bf16.msra.mxu1 %v4278_v15  ;;  %v4365_v15 = vld [vmem:[#allocation7 + $0x264] ss:$20 sps:$4 sm:$0xff]  }
  0xf2   :  { %2485 = vmatprep.subr.bf16.mxu1 %v4286_v17  ;;  %2529 = vmatpush2.bf16.msra.mxu0 %v4287_v20  ;;  %v4363_v17 = vld [vmem:[#allocation7 + $0x260] ss:$20 sps:$4 sm:$0xff]  }
  0xf3   :  { %2530 = vmatprep.subr.bf16.mxu0 %v4295_v23  ;;  %v4374_v20 = vld [vmem:[#allocation7 + $0x494] ss:$20 sps:$4 sm:$0xff]   ;;  %v4372_v23 = vld [vmem:[#allocation7 + $0x490] ss:$20 sps:$4 sm:$0xff]  }
  0xf5   :  { %2486 = vmatpush2.bf16.msra.mxu1 %v4284_v19  ;;  %v4371_v19 = vld [vmem:[#allocation7 + $0x23c] ss:$20 sps:$4 sm:$0xff]  }
  0xf6   :  { %2487 = vmatprep.subr.bf16.mxu1 %v4292_v21  ;;  %2531 = vmatpush2.bf16.msra.mxu0 %v4293_v25  ;;  %v4369_v21 = vld [vmem:[#allocation7 + $0x238] ss:$20 sps:$4 sm:$0xff]  }
  0xf7   :  { %2532 = vmatprep.subr.bf16.mxu0 %v4301_v28  ;;  %v4380_v25 = vld [vmem:[#allocation7 + $0x46c] ss:$20 sps:$4 sm:$0xff]   ;;  %v4378_v28 = vld [vmem:[#allocation7 + $0x468] ss:$20 sps:$4 sm:$0xff]  }
  0xf9   :  { %2488 = vmatpush2.bf16.msra.mxu1 %v4290_v24  ;;  %v4377_v24 = vld [vmem:[#allocation7 + $0x214] ss:$20 sps:$4 sm:$0xff]  }
  0xfa   :  { %2489 = vmatprep.subr.bf16.mxu1 %v4298_v27  ;;  %2533 = vmatpush2.bf16.msra.mxu0 %v4299_v30  ;;  %v4375_v27 = vld [vmem:[#allocation7 + $0x210] ss:$20 sps:$4 sm:$0xff]  }
  0xfb   :  { %2534 = vmatprep.subr.bf16.mxu0 %v4307_v32  ;;  %v4386_v30 = vld [vmem:[#allocation7 + $0x444] ss:$20 sps:$4 sm:$0xff]   ;;  %v4384_v32 = vld [vmem:[#allocation7 + $0x440] ss:$20 sps:$4 sm:$0xff]  }
  0xfd   :  { %2490 = vmatpush2.bf16.msra.mxu1 %v4296_v29  ;;  %v4383_v29 = vld [vmem:[#allocation7 + $0x1ec] ss:$20 sps:$4 sm:$0xff]  }
  0xfe   :  { %2491 = vmatprep.subr.bf16.mxu1 %v4304_v31  ;;  %2535 = vmatpush2.bf16.msra.mxu0 %v4305_v34  ;;  %v4381_v31 = vld [vmem:[#allocation7 + $0x1e8] ss:$20 sps:$4 sm:$0xff]  }
  0xff   :  { %2586 = vmatprep.subr.bf16.mxu0 %v4314_v36  ;;  %v4392_v34 = vld [vmem:[#allocation7 + $0x41c] ss:$20 sps:$4 sm:$0xff]   ;;  %v4390_v36 = vld [vmem:[#allocation7 + $0x418] ss:$20 sps:$4 sm:$0xff]  }
 0x101   :  { %2492 = vmatpush2.bf16.msra.mxu1 %v4302_v33  ;;  %2537 = vmatmul.mubr.bf16.vlgmr.msra.gmra.mxu0 %v4993_v39  ;;  %v4389_v33 = vld [vmem:[#allocation7 + $0x1c4] ss:$20 sps:$4 sm:$0xff]  }
 0x102   :  { %2493 = vmatprep.subr.bf16.mxu1 %v4310_v35  ;;  %2587 = vmatpush1.bf16.msra.mxu0 %v4312_v38  ;;  %v4387_v35 = vld [vmem:[#allocation7 + $0x1c0] ss:$20 sps:$4 sm:$0xff]  }
 0x103   :  { %2588 = vmatprep.subr.bf16.mxu0 %v4320_v41  ;;  %2618 = vmatprep.mubr.bf16.mxu0 %v4962_v8  ;;  %v4398_v38 = vld [vmem:[#allocation7 + $0x3f4] ss:$20 sps:$4 sm:$0xff]   ;;  %v4396_v41 = vld [vmem:[#allocation7 + $0x3f0] ss:$20 sps:$4 sm:$0xff]  }
 0x105   :  { %2494 = vmatpush2.bf16.msra.mxu1 %v4308_v37  ;;  %v4395_v37 = vld [vmem:[#allocation7 + $0x19c] ss:$20 sps:$4 sm:$0xff]  }
 0x106   :  { %2545 = vmatprep.subr.bf16.mxu1 %v4317_v40  ;;  %2589 = vmatpush1.bf16.msra.mxu0 %v4318_v44  ;;  %v4393_v40 = vld [vmem:[#allocation7 + $0x198] ss:$20 sps:$4 sm:$0xff]  }
 0x107   :  { %2590 = vmatprep.subr.bf16.mxu0 %v4326_v46  ;;  %v4404_v44 = vld [vmem:[#allocation7 + $0x3cc] ss:$20 sps:$4 sm:$0xff]   ;;  %v4402_v46 = vld [vmem:[#allocation7 + $0x3c8] ss:$20 sps:$4 sm:$0xff]  }
 0x108   :  { %2496 = vmatmul.mubr.bf16.vlgmr.msra.gmra.mxu1 %v4998_v42 }
 0x109   :  { %2546 = vmatpush1.bf16.msra.mxu1 %v4315_v43  ;;  %2577 = vmatprep.mubr.bf16.mxu1 %v4960_v6  ;;  %v4401_v43 = vld [vmem:[#allocation7 + $0x174] ss:$20 sps:$4 sm:$0xff]  }
 0x10a   :  { %2547 = vmatprep.subr.bf16.mxu1 %v4323_v45  ;;  %2591 = vmatpush1.bf16.msra.mxu0 %v4324_v48  ;;  %v4399_v45 = vld [vmem:[#allocation7 + $0x170] ss:$20 sps:$4 sm:$0xff]  }
 0x10b   :  { %2592 = vmatprep.subr.bf16.mxu0 %v4332_v51  ;;  %v4410_v48 = vld [vmem:[#allocation7 + $0x8a4] ss:$20 sps:$4 sm:$0xff]   ;;  %v4408_v51 = vld [vmem:[#allocation7 + $0x8a0] ss:$20 sps:$4 sm:$0xff]  }
 0x10d   :  { %2548 = vmatpush1.bf16.msra.mxu1 %v4321_v47  ;;  %v4407_v47 = vld [vmem:[#allocation7 + $0x14c] ss:$20 sps:$4 sm:$0xff]  }
 0x10e   :  { %2549 = vmatprep.subr.bf16.mxu1 %v4329_v49  ;;  %2593 = vmatpush1.bf16.msra.mxu0 %v4330_v53  ;;  %v4405_v49 = vld [vmem:[#allocation7 + $0x148] ss:$20 sps:$4 sm:$0xff]  }
 0x10f   :  { %2594 = vmatprep.subr.bf16.mxu0 %v4338_v56  ;;  %v4416_v53 = vld [vmem:[#allocation7 + $0x87c] ss:$20 sps:$4 sm:$0xff]   ;;  %v4414_v56 = vld [vmem:[#allocation7 + $0x878] ss:$20 sps:$4 sm:$0xff]  }
 0x111   :  { %2550 = vmatpush1.bf16.msra.mxu1 %v4327_v52  ;;  %v4413_v52 = vld [vmem:[#allocation7 + $0x624] ss:$20 sps:$4 sm:$0xff]  }
 0x112   :  { %2551 = vmatprep.subr.bf16.mxu1 %v4335_v54  ;;  %2595 = vmatpush1.bf16.msra.mxu0 %v4336_v58  ;;  %v4411_v54 = vld [vmem:[#allocation7 + $0x620] ss:$20 sps:$4 sm:$0xff]  }
 0x113   :  { %2596 = vmatprep.subr.bf16.mxu0 %v4344_v60  ;;  %v4422_v58 = vld [vmem:[#allocation7 + $0x854] ss:$20 sps:$4 sm:$0xff]  }
 0x115   :  { %2552 = vmatpush1.bf16.msra.mxu1 %v4333_v57  ;;  %v4419_v57 = vld [vmem:[#allocation7 + $0x5fc] ss:$20 sps:$4 sm:$0xff]  }
 0x116   :  { %2553 = vmatprep.subr.bf16.mxu1 %v4341_v59  ;;  %2597 = vmatpush1.bf16.msra.mxu0 %v4342_v63  ;;  %v4417_v59 = vld [vmem:[#allocation7 + $0x5f8] ss:$20 sps:$4 sm:$0xff]   ;;  %v4425_v63 = vld [vmem:[#allocation7 + $0x5d4] ss:$20 sps:$4 sm:$0xff]  }
 0x117   :  { %2598 = vmatprep.subr.bf16.mxu0 %v4350_v2  ;;  %v4428_v2 = vld [vmem:[#allocation7 + $0x82c] ss:$20 sps:$4 sm:$0xff]  }
 0x119   :  { %2554 = vmatpush1.bf16.msra.mxu1 %v4339_v62  ;;  %v4420_v62 = vld [vmem:[#allocation7 + $0x850] ss:$20 sps:$4 sm:$0xff]  }
 0x11a   :  { %2555 = vmatprep.subr.bf16.mxu1 %v4347_v55  ;;  %2599 = vmatpush1.bf16.msra.mxu0 %v4348_v4  ;;  %v694_v4 = vsub.s32 0, %v4950_v50 }
 0x11b   :  { %2600 = vmatprep.subr.bf16.mxu0 %v4356_v7  ;;  %v4431_v7 = vld [vmem:[#allocation7 + $0x5ac] ss:$20 sps:$4 sm:$0xff]  }
 0x11d   :  { %2556 = vmatpush1.bf16.msra.mxu1 %v4345_v3  ;;  %v4423_v3 = vld [vmem:[#allocation7 + $0x5d0] ss:$20 sps:$4 sm:$0xff]  }
 0x11e   :  { %2557 = vmatprep.subr.bf16.mxu1 %v4353_v5  ;;  %2601 = vmatpush1.bf16.msra.mxu0 %v4354_v10  ;;  %v4426_v5 = vld [vmem:[#allocation7 + $0x828] ss:$20 sps:$4 sm:$0xff]  }
 0x11f   :  { %2602 = vmatprep.subr.bf16.mxu0 %v4362_v12  ;;  %v4429_v10 = vld [vmem:[#allocation7 + $0x5a8] ss:$20 sps:$4 sm:$0xff]   ;;  %v4437_v12 = vld [vmem:[#allocation7 + $0x584] ss:$20 sps:$4 sm:$0xff]  }
 0x121   :  { %2558 = vmatpush1.bf16.msra.mxu1 %v4351_v9  ;;  %v4434_v9 = vld [vmem:[#allocation7 + $0x804] ss:$20 sps:$4 sm:$0xff]  }
 0x122   :  { %2559 = vmatprep.subr.bf16.mxu1 %v4359_v11  ;;  %2603 = vmatpush2.bf16.msra.mxu0 %v4360_v14  ;;  %v4432_v11 = vld [vmem:[#allocation7 + $0x800] ss:$20 sps:$4 sm:$0xff]  }
 0x123   :  { %2604 = vmatprep.subr.bf16.mxu0 %v4368_v16  ;;  %v4435_v14 = vld [vmem:[#allocation7 + $0x580] ss:$20 sps:$4 sm:$0xff]   ;;  %v4443_v16 = vld [vmem:[#allocation7 + $0x55c] ss:$20 sps:$4 sm:$0xff]  }
 0x125   :  { %2560 = vmatpush1.bf16.msra.mxu1 %v4357_v13  ;;  %v4440_v13 = vld [vmem:[#allocation7 + $0x7dc] ss:$20 sps:$4 sm:$0xff]  }
 0x126   :  { %2561 = vmatprep.subr.bf16.mxu1 %v4365_v15  ;;  %2605 = vmatpush2.bf16.msra.mxu0 %v4366_v18  ;;  %v4438_v15 = vld [vmem:[#allocation7 + $0x7d8] ss:$20 sps:$4 sm:$0xff]  }
 0x127   :  { %2606 = vmatprep.subr.bf16.mxu0 %v4374_v20  ;;  %v4441_v18 = vld [vmem:[#allocation7 + $0x558] ss:$20 sps:$4 sm:$0xff]   ;;  %v4449_v20 = vld [vmem:[#allocation7 + $0x534] ss:$20 sps:$4 sm:$0xff]  }
 0x129   :  { %2562 = vmatpush2.bf16.msra.mxu1 %v4363_v17  ;;  %v4446_v17 = vld [vmem:[#allocation7 + $0x7b4] ss:$20 sps:$4 sm:$0xff]  }
 0x12a   :  { %2563 = vmatprep.subr.bf16.mxu1 %v4371_v19  ;;  %2607 = vmatpush2.bf16.msra.mxu0 %v4372_v23  ;;  %v4444_v19 = vld [vmem:[#allocation7 + $0x7b0] ss:$20 sps:$4 sm:$0xff]  }
 0x12b   :  { %2608 = vmatprep.subr.bf16.mxu0 %v4380_v25  ;;  %v4447_v23 = vld [vmem:[#allocation7 + $0x530] ss:$20 sps:$4 sm:$0xff]   ;;  %v4455_v25 = vld [vmem:[#allocation7 + $0x50c] ss:$20 sps:$4 sm:$0xff]  }
 0x12d   :  { %2564 = vmatpush2.bf16.msra.mxu1 %v4369_v21  ;;  %v4452_v21 = vld [vmem:[#allocation7 + $0x78c] ss:$20 sps:$4 sm:$0xff]  }
 0x12e   :  { %2565 = vmatprep.subr.bf16.mxu1 %v4377_v24  ;;  %2609 = vmatpush2.bf16.msra.mxu0 %v4378_v28  ;;  %v4450_v24 = vld [vmem:[#allocation7 + $0x788] ss:$20 sps:$4 sm:$0xff]  }
 0x12f   :  { %2610 = vmatprep.subr.bf16.mxu0 %v4386_v30  ;;  %v4453_v28 = vld [vmem:[#allocation7 + $0x508] ss:$20 sps:$4 sm:$0xff]   ;;  %v4461_v30 = vld [vmem:[#allocation7 + $0x764] ss:$20 sps:$4 sm:$0xff]  }
 0x131   :  { %2566 = vmatpush2.bf16.msra.mxu1 %v4375_v27  ;;  %v4458_v27 = vld [vmem:[#allocation7 + $0x9e4] ss:$20 sps:$4 sm:$0xff]  }
 0x132   :  { %2567 = vmatprep.subr.bf16.mxu1 %v4383_v29  ;;  %2611 = vmatpush2.bf16.msra.mxu0 %v4384_v32  ;;  %v4456_v29 = vld [vmem:[#allocation7 + $0x9e0] ss:$20 sps:$4 sm:$0xff]  }
 0x133   :  { %2612 = vmatprep.subr.bf16.mxu0 %v4392_v34  ;;  %v4459_v32 = vld [vmem:[#allocation7 + $0x760] ss:$20 sps:$4 sm:$0xff]   ;;  %v4467_v34 = vld [vmem:[#allocation7 + $0x73c] ss:$20 sps:$4 sm:$0xff]  }
 0x135   :  { %2568 = vmatpush2.bf16.msra.mxu1 %v4381_v31  ;;  %v4464_v31 = vld [vmem:[#allocation7 + $0x9bc] ss:$20 sps:$4 sm:$0xff]  }
 0x136   :  { %2569 = vmatprep.subr.bf16.mxu1 %v4389_v33  ;;  %2613 = vmatpush2.bf16.msra.mxu0 %v4390_v36  ;;  %v4462_v33 = vld [vmem:[#allocation7 + $0x9b8] ss:$20 sps:$4 sm:$0xff]  }
 0x137   :  { %2614 = vmatprep.subr.bf16.mxu0 %v4398_v38  ;;  %v4465_v36 = vld [vmem:[#allocation7 + $0x738] ss:$20 sps:$4 sm:$0xff]   ;;  %v4473_v38 = vld [vmem:[#allocation7 + $0x714] ss:$20 sps:$4 sm:$0xff]  }
 0x139   :  { %2570 = vmatpush2.bf16.msra.mxu1 %v4387_v35  ;;  %v4470_v35 = vld [vmem:[#allocation7 + $0x994] ss:$20 sps:$4 sm:$0xff]  }
 0x13a   :  { %2571 = vmatprep.subr.bf16.mxu1 %v4395_v37  ;;  %2615 = vmatpush2.bf16.msra.mxu0 %v4396_v41  ;;  %v4468_v37 = vld [vmem:[#allocation7 + $0x990] ss:$20 sps:$4 sm:$0xff]  }
 0x13b   :  { %2616 = vmatprep.subr.bf16.mxu0 %v4404_v44  ;;  %v4471_v41 = vld [vmem:[#allocation7 + $0x710] ss:$20 sps:$4 sm:$0xff]   ;;  %v4479_v44 = vld [vmem:[#allocation7 + $0x6ec] ss:$20 sps:$4 sm:$0xff]  }
 0x13d   :  { %2572 = vmatpush2.bf16.msra.mxu1 %v4393_v40  ;;  %v4476_v40 = vld [vmem:[#allocation7 + $0x96c] ss:$20 sps:$4 sm:$0xff]  }
 0x13e   :  { %2573 = vmatprep.subr.bf16.mxu1 %v4401_v43  ;;  %2617 = vmatpush2.bf16.msra.mxu0 %v4402_v46  ;;  %v4474_v43 = vld [vmem:[#allocation7 + $0x968] ss:$20 sps:$4 sm:$0xff]  }
 0x13f   :  { %2668 = vmatprep.subr.bf16.mxu0 %v4410_v48  ;;  %v4477_v46 = vld [vmem:[#allocation7 + $0x6e8] ss:$20 sps:$4 sm:$0xff]   ;;  %v4485_v48 = vld [vmem:[#allocation7 + $0x6c4] ss:$20 sps:$4 sm:$0xff]  }
 0x141   :  { %2574 = vmatpush2.bf16.msra.mxu1 %v4399_v45  ;;  %2619 = vmatmul.mubr.bf16.vlgmr.msra.gmra.mxu0 %v4966_v22  ;;  %v4482_v45 = vld [vmem:[#allocation7 + $0x944] ss:$20 sps:$4 sm:$0xff]  }
 0x142   :  { %2575 = vmatprep.subr.bf16.mxu1 %v4407_v47  ;;  %2669 = vmatpush1.bf16.msra.mxu0 %v4408_v51  ;;  %v4480_v47 = vld [vmem:[#allocation7 + $0x940] ss:$20 sps:$4 sm:$0xff]  }
 0x143   :  { %2670 = vmatprep.subr.bf16.mxu0 %v4416_v53  ;;  %2700 = vmatprep.mubr.bf16.mxu0 %v4987_v1  ;;  %v4483_v51 = vld [vmem:[#allocation7 + $0x6c0] ss:$20 sps:$4 sm:$0xff]   ;;  %v4491_v53 = vld [vmem:[#allocation7 + $0x69c] ss:$20 sps:$4 sm:$0xff]  }
 0x145   :  { %2576 = vmatpush2.bf16.msra.mxu1 %v4405_v49  ;;  %v4488_v49 = vld [vmem:[#allocation7 + $0x91c] ss:$20 sps:$4 sm:$0xff]  }
 0x146   :  { %2627 = vmatprep.subr.bf16.mxu1 %v4413_v52  ;;  %2671 = vmatpush1.bf16.msra.mxu0 %v4414_v56  ;;  %v4486_v52 = vld [vmem:[#allocation7 + $0x918] ss:$20 sps:$4 sm:$0xff]  }
 0x147   :  { %2672 = vmatprep.subr.bf16.mxu0 %v4422_v58  ;;  %v4489_v56 = vld [vmem:[#allocation7 + $0x698] ss:$20 sps:$4 sm:$0xff]   ;;  %v4497_v58 = vld [vmem:[#allocation7 + $0x674] ss:$20 sps:$4 sm:$0xff]  }
 0x148   :  { %v5005_v60 = vpop.f32.mrf.mxu1  ;;  %2578 = vmatmul.mubr.bf16.vlgmr.msra.gmra.mxu1 %v4969_v26 }
 0x149   :  { %2628 = vmatpush1.bf16.msra.mxu1 %v4411_v54  ;;  %2659 = vmatprep.mubr.bf16.mxu1 %v4985_v61  ;;  %v4494_v54 = vld [vmem:[#allocation7 + $0x8f4] ss:$20 sps:$4 sm:$0xff]  }
 0x14a   :  { %v4035_v55 = vpop.f32.mrf.mxu1  ;;  %2629 = vmatprep.subr.bf16.mxu1 %v4419_v57  ;;  %2673 = vmatpush1.bf16.msra.mxu0 %v4420_v62  ;;  %v4492_v57 = vld [vmem:[#allocation7 + $0x8f0] ss:$20 sps:$4 sm:$0xff]  }
 0x14b   :  { %2674 = vmatprep.subr.bf16.mxu0 %v4428_v2  ;;  %v4495_v62 = vld [vmem:[#allocation7 + $0x670] ss:$20 sps:$4 sm:$0xff]   ;;  %v4503_v55 = vld [vmem:[#allocation7 + $0x64c] ss:$20 sps:$4 sm:$0xff]   ;;  %v4504_v2 = vld [vmem:[#allocation7 + $0x4e8] ss:$20 sps:$4 sm:$0xff]  }
 0x14d   :  { %2630 = vmatpush1.bf16.msra.mxu1 %v4417_v59  ;;  %v4500_v59 = vld [vmem:[#allocation7 + $0x8cc] ss:$20 sps:$4 sm:$0xff]  }
 0x14e   :  { %2631 = vmatprep.subr.bf16.mxu1 %v4425_v63  ;;  %2675 = vmatpush1.bf16.msra.mxu0 %v4426_v5  ;;  %v4498_v63 = vld [vmem:[#allocation7 + $0x8c8] ss:$20 sps:$4 sm:$0xff]  }
 0x14f   :  { %2676 = vmatprep.subr.bf16.mxu0 %v4434_v9  ;;  %v4505_v5 = vld [vmem:[#allocation7 + $0x3a8] ss:$20 sps:$4 sm:$0xff]  }
 0x150   :  { %v4506_v9 = vld [vmem:[#allocation7 + $0x268] ss:$20 sps:$4 sm:$0xff]  }
 0x151   :  { %2632 = vmatpush1.bf16.msra.mxu1 %v4423_v3  ;;  %v4501_v3 = vld [vmem:[#allocation7 + $0x648] ss:$20 sps:$4 sm:$0xff]  }
 0x152   :  { %2633 = vmatprep.subr.bf16.mxu1 %v4431_v7  ;;  %2677 = vmatpush1.bf16.msra.mxu0 %v4432_v11  ;;  %v5010_v7 = vld [vmem:[#allocation9] sm:$0x1f]  ;;  %v4508_v11 = vld [vmem:[#allocation7 + $0x128] ss:$20 sps:$4 sm:$0xff]  }
 0x153   :  { %2678 = vmatprep.subr.bf16.mxu0 %v4440_v13 }
 0x155   :  { %2634 = vmatpush1.bf16.msra.mxu1 %v4429_v10  ;;  %v4507_v10 = vld [vmem:[#allocation7 + $0x4c0] ss:$20 sps:$4 sm:$0xff]  }
 0x156   :  { %2635 = vmatprep.subr.bf16.mxu1 %v4437_v12  ;;  %2679 = vmatpush1.bf16.msra.mxu0 %v4438_v15  ;;  %v4509_v12 = vld [vmem:[#allocation7 + $0x380] ss:$20 sps:$4 sm:$0xff]   ;;  %v695_v15 = vrot.slane %v5010_v7, %v694_v4 }
 0x157   :  { %2680 = vmatprep.subr.bf16.mxu0 %v4446_v17  ;;  %v4511_v17 = vld [vmem:[#allocation7 + $0x498] ss:$20 sps:$4 sm:$0xff]  }
 0x159   :  { %2636 = vmatpush1.bf16.msra.mxu1 %v4435_v14  ;;  %v4510_v14 = vld [vmem:[#allocation7 + $0x240] ss:$20 sps:$4 sm:$0xff]  }
 0x15a   :  { %2637 = vmatprep.subr.bf16.mxu1 %v4443_v16  ;;  %2681 = vmatpush1.bf16.msra.mxu0 %v4444_v19  ;;  %v4513_v19 = vld [vmem:[#allocation7 + $0x358] ss:$20 sps:$4 sm:$0xff]  }
 0x15b   :  { %2682 = vmatprep.subr.bf16.mxu0 %v4452_v21 }
 0x15d   :  { %2638 = vmatpush1.bf16.msra.mxu1 %v4441_v18  ;;  %v4512_v18 = vld [vmem:[#allocation7 + $0x100] ss:$20 sps:$4 sm:$0xff]  }
 0x15e   :  { %2639 = vmatprep.subr.bf16.mxu1 %v4449_v20  ;;  %2683 = vmatpush1.bf16.msra.mxu0 %v4450_v24  ;;  %v4515_v24 = vld [vmem:[#allocation7 + $0x470] ss:$20 sps:$4 sm:$0xff]  }
 0x15f   :  { %2684 = vmatprep.subr.bf16.mxu0 %v4458_v27 }
 0x161   :  { %2640 = vmatpush1.bf16.msra.mxu1 %v4447_v23  ;;  %v4514_v23 = vld [vmem:[#allocation7 + $0x218] ss:$20 sps:$4 sm:$0xff]  }
 0x162   :  { %2641 = vmatprep.subr.bf16.mxu1 %v4455_v25  ;;  %2685 = vmatpush2.bf16.msra.mxu0 %v4456_v29  ;;  %v4517_v29 = vld [vmem:[#allocation7 + $0x330] ss:$20 sps:$4 sm:$0xff]  }
 0x163   :  { %2686 = vmatprep.subr.bf16.mxu0 %v4464_v31 }
 0x165   :  { %2642 = vmatpush1.bf16.msra.mxu1 %v4453_v28  ;;  %v4516_v28 = vld [vmem:[#allocation7 + $0xd8] ss:$20 sps:$4 sm:$0xff]  }
 0x166   :  { %2643 = vmatprep.subr.bf16.mxu1 %v4461_v30  ;;  %2687 = vmatpush2.bf16.msra.mxu0 %v4462_v33  ;;  %v4519_v33 = vld [vmem:[#allocation7 + $0x448] ss:$20 sps:$4 sm:$0xff]  }
 0x167   :  { %2688 = vmatprep.subr.bf16.mxu0 %v4470_v35  ;;  %v4521_v35 = vld [vmem:[#allocation7 + $0x308] ss:$20 sps:$4 sm:$0xff]  }
 0x169   :  { %2644 = vmatpush2.bf16.msra.mxu1 %v4459_v32  ;;  %v4518_v32 = vld [vmem:[#allocation7 + $0x1f0] ss:$20 sps:$4 sm:$0xff]  }
 0x16a   :  { %2645 = vmatprep.subr.bf16.mxu1 %v4467_v34  ;;  %2689 = vmatpush2.bf16.msra.mxu0 %v4468_v37  ;;  %v4520_v34 = vld [vmem:[#allocation7 + $0xb0] ss:$20 sps:$4 sm:$0xff]   ;;  %v4523_v37 = vld [vmem:[#allocation7 + $0x420] ss:$20 sps:$4 sm:$0xff]  }
 0x16b   :  { %2690 = vmatprep.subr.bf16.mxu0 %v4476_v40  ;;  %v4526_v40 = vld [vmem:[#allocation7 + $0x1a0] ss:$20 sps:$4 sm:$0xff]  }
 0x16d   :  { %2646 = vmatpush2.bf16.msra.mxu1 %v4465_v36  ;;  %v4522_v36 = vld [vmem:[#allocation7 + $0x1c8] ss:$20 sps:$4 sm:$0xff]  }
 0x16e   :  { %2647 = vmatprep.subr.bf16.mxu1 %v4473_v38  ;;  %2691 = vmatpush2.bf16.msra.mxu0 %v4474_v43  ;;  %v4525_v38 = vld [vmem:[#allocation7 + $0x2e0] ss:$20 sps:$4 sm:$0xff]  }
 0x16f   :  { %2692 = vmatprep.subr.bf16.mxu0 %v4482_v45  ;;  %v4528_v43 = vld [vmem:[#allocation7 + $0x60] ss:$20 sps:$4 sm:$0xff]   ;;  %v4530_v45 = vld [vmem:[#allocation7 + $0x178] ss:$20 sps:$4 sm:$0xff]  }
 0x171   :  { %2648 = vmatpush2.bf16.msra.mxu1 %v4471_v41  ;;  %v4527_v41 = vld [vmem:[#allocation7 + $0x3f8] ss:$20 sps:$4 sm:$0xff]  }
 0x172   :  { %2649 = vmatprep.subr.bf16.mxu1 %v4479_v44  ;;  %2693 = vmatpush2.bf16.msra.mxu0 %v4480_v47  ;;  %v4529_v44 = vld [vmem:[#allocation7 + $0x2b8] ss:$20 sps:$4 sm:$0xff]  }
 0x173   :  { %2694 = vmatprep.subr.bf16.mxu0 %v4488_v49  ;;  %v4532_v47 = vld [vmem:[#allocation7 + $0x38] ss:$20 sps:$4 sm:$0xff]   ;;  %v4534_v49 = vld [vmem:[#allocation7 + $0x150] ss:$20 sps:$4 sm:$0xff]  }
 0x175   :  { %2650 = vmatpush2.bf16.msra.mxu1 %v4477_v46  ;;  %v4531_v46 = vld [vmem:[#allocation7 + $0x3d0] ss:$20 sps:$4 sm:$0xff]  }
 0x176   :  { %2651 = vmatprep.subr.bf16.mxu1 %v4485_v48  ;;  %2695 = vmatpush2.bf16.msra.mxu0 %v4486_v52  ;;  %v4533_v48 = vld [vmem:[#allocation7 + $0x290] ss:$20 sps:$4 sm:$0xff]  }
 0x177   :  { %2696 = vmatprep.subr.bf16.mxu0 %v4494_v54  ;;  %v4536_v52 = vld [vmem:[#allocation7 + $0x10] ss:$20 sps:$4 sm:$0xff]   ;;  %v4538_v54 = vld [vmem:[#allocation7 + $0x768] ss:$20 sps:$4 sm:$0xff]  }
 0x179   :  { %2652 = vmatpush2.bf16.msra.mxu1 %v4483_v51  ;;  %v4535_v51 = vld [vmem:[#allocation7 + $0x9e8] ss:$20 sps:$4 sm:$0xff]  }
 0x17a   :  { %2653 = vmatprep.subr.bf16.mxu1 %v4491_v53  ;;  %2697 = vmatpush2.bf16.msra.mxu0 %v4492_v57  ;;  %v4537_v53 = vld [vmem:[#allocation7 + $0x8a8] ss:$20 sps:$4 sm:$0xff]  }
 0x17b   :  { %2698 = vmatprep.subr.bf16.mxu0 %v4500_v59  ;;  %v4540_v57 = vld [vmem:[#allocation7 + $0x628] ss:$20 sps:$4 sm:$0xff]   ;;  %v4542_v59 = vld [vmem:[#allocation7 + $0x740] ss:$20 sps:$4 sm:$0xff]  }
 0x17d   :  { %2654 = vmatpush2.bf16.msra.mxu1 %v4489_v56  ;;  %v4539_v56 = vld [vmem:[#allocation7 + $0x9c0] ss:$20 sps:$4 sm:$0xff]  }
 0x17e   :  { %2655 = vmatprep.subr.bf16.mxu1 %v4497_v58  ;;  %2699 = vmatpush2.bf16.msra.mxu0 %v4498_v63  ;;  %v4541_v58 = vld [vmem:[#allocation7 + $0x880] ss:$20 sps:$4 sm:$0xff]  }
 0x17f   :  { %3886 = vmatprep.subr.bf16.mxu0 %v4504_v2  ;;  %v4544_v63 = vld [vmem:[#allocation7 + $0x600] ss:$20 sps:$4 sm:$0xff]   ;;  %v4546_v2 = vld [vmem:[#allocation7 + $0x718] ss:$20 sps:$4 sm:$0xff]  }
 0x181   :  { %2656 = vmatpush2.bf16.msra.mxu1 %v4495_v62  ;;  %v2456_v13 = vpop.f32.mrf.mxu0  ;;  %2701 = vmatmul.mubr.bf16.vlgmr.msra.gmra.mxu0 %v4993_v39  ;;  %v4543_v62 = vld [vmem:[#allocation7 + $0x998] ss:$20 sps:$4 sm:$0xff]  }
 0x182   :  { %2657 = vmatprep.subr.bf16.mxu1 %v4503_v55  ;;  %3887 = vmatpush3.bf16.msra.mxu0 %v4505_v5  ;;  %v4545_v55 = vld [vmem:[#allocation7 + $0x858] ss:$20 sps:$4 sm:$0xff]   ;;  %v4549_v5 = vld [vmem:[#allocation7 + $0x830] ss:$20 sps:$4 sm:$0xff]  }
 0x183   :  { %v5016_v16 = vpop.f32.mrf.mxu0  ;;  %3888 = vmatprep.subr.bf16.mxu0 %v4507_v10  ;;  %2781 = vmatprep.mubr.bf16.mxu0 %v4962_v8  ;;  %v4553_v10 = vld [vmem:[#allocation7 + $0x808] ss:$20 sps:$4 sm:$0xff]  }
 0x185   :  { %2658 = vmatpush2.bf16.msra.mxu1 %v4501_v3  ;;  %v2460_v21 = vpop.f32.mrf.mxu0  ;;  %v4548_v3 = vld [vmem:[#allocation7 + $0x5d8] ss:$20 sps:$4 sm:$0xff]  }
 0x186   :  { %3864 = vmatprep.subr.bf16.mxu1 %v4506_v9  ;;  %3889 = vmatpush3.bf16.msra.mxu0 %v4509_v12  ;;  %v4550_v9 = vld [vmem:[#allocation7 + $0x6f0] ss:$20 sps:$4 sm:$0xff]   ;;  %v4555_v12 = vld [vmem:[#allocation7 + $0x920] ss:$20 sps:$4 sm:$0xff]   ;;  %v698_v21 = vsub.s32 1, %v4950_v50 }
 0x187   :  { %v2461_v4 = vpop.f32.mrf.mxu0  ;;  %3890 = vmatprep.subr.bf16.mxu0 %v4511_v17  ;;  %v4560_v17 = vld [vmem:[#allocation7 + $0x560] ss:$20 sps:$4 sm:$0xff]  }
 0x188   :  { %v2415_v20 = vpop.f32.mrf.mxu1  ;;  %2660 = vmatmul.mubr.bf16.vlgmr.msra.gmra.mxu1 %v4998_v42  ;;  %v4584_v4 = vld [vmem:[#allocation12 + $0xf8] sm:$0xff]  }
 0x189   :  { %v2416_v25 = vadd.f32 %v2415_v20, %v695_v15  ;;  %3865 = vmatpush3.bf16.msra.mxu1 %v4508_v11  ;;  %2741 = vmatprep.mubr.bf16.mxu1 %v4960_v6  ;;  %v4524_v6 = vld [vmem:[#allocation7 + $0x88] ss:$20 sps:$4 sm:$0xff]   ;;  %v4559_v15 = vld [vmem:[#allocation7 + $0x8f8] ss:$20 sps:$4 sm:$0xff]   ;;  %v4563_v20 = vld [vmem:[#allocation7 + $0x8d0] ss:$20 sps:$4 sm:$0xff]  }
 0x18a   :  { %v5020_v27 = vpop.f32.mrf.mxu1  ;;  %3866 = vmatprep.subr.bf16.mxu1 %v4510_v14  ;;  %3891 = vmatpush3.bf16.msra.mxu0 %v4513_v19  ;;  %v4554_v11 = vld [vmem:[#allocation7 + $0x6c8] ss:$20 sps:$4 sm:$0xff]   ;;  %v4558_v14 = vld [vmem:[#allocation7 + $0x6a0] ss:$20 sps:$4 sm:$0xff]   ;;  %v4562_v19 = vld [vmem:[#allocation7 + $0x678] ss:$20 sps:$4 sm:$0xff]  }
 0x18b   :  { %v5023_v30 = vadd.f32 %v2456_v13, %v2416_v25  ;;  %3892 = vmatprep.subr.bf16.mxu0 %v4515_v24  ;;  %v4556_v13 = vld [vmem:[#allocation7 + $0x588] ss:$20 sps:$4 sm:$0xff]   ;;  %v4565_v24 = vld [vmem:[#allocation7 + $0x790] ss:$20 sps:$4 sm:$0xff]  }
 0x18c   :  { %v2419_v8 = vpop.f32.mrf.mxu1  ;;  %v4566_v25 = vld [vmem:[#allocation7 + $0x650] ss:$20 sps:$4 sm:$0xff]  }
 0x18d   :  { %3867 = vmatpush3.bf16.msra.mxu1 %v4512_v18  ;;  %v4561_v18 = vld [vmem:[#allocation7 + $0x7b8] ss:$20 sps:$4 sm:$0xff]  }
 0x18e   :  { %v2420_v31 = vpop.f32.mrf.mxu1  ;;  %3868 = vmatprep.subr.bf16.mxu1 %v4514_v23  ;;  %3893 = vmatpush3.bf16.msra.mxu0 %v4517_v29  ;;  %v4564_v23 = vld [vmem:[#allocation7 + $0x538] ss:$20 sps:$4 sm:$0xff]   ;;  %v4567_v29 = vld [vmem:[#allocation7 + $0x510] ss:$20 sps:$4 sm:$0xff]  }
 0x18f   :  { %3894 = vmatprep.subr.bf16.mxu0 %v4519_v33  ;;  %v4585_v8 = vld [vmem:[#allocation12 + $0xb8] sm:$0xff]  }
 0x190   :  { %v4568_v31 = vld [vmem:[#allocation12 + $0x78] sm:$0xff]  }
 0x191   :  { %3869 = vmatpush3.bf16.msra.mxu1 %v4516_v28  ;;  %v699_v28 = vrot.slane %v5010_v7, %v698_v21 }
 0x192   :  { %3870 = vmatprep.subr.bf16.mxu1 %v4518_v32  ;;  %3895 = vmatpush3.bf16.msra.mxu0 %v4521_v35  ;;  %v4586_v32 = vld [vmem:[#allocation12 + $0xf0] sm:$0xff]   ;;  %v4569_v35 = vld [vmem:[#allocation12 + $0x38] sm:$0xff]  }
 0x193   :  { %3896 = vmatprep.subr.bf16.mxu0 %v4523_v37 }
 0x195   :  { %3871 = vmatpush3.bf16.msra.mxu1 %v4520_v34  ;;  %v2418_v34 = vadd.f32 %v5020_v27, %v699_v28  ;;  %v4607_v28 = vld [vmem:[#allocation12 + $0x110] sm:$0xff]  }
 0x196   :  { %3872 = vmatprep.subr.bf16.mxu1 %v4522_v36  ;;  %3897 = vmatpush3.bf16.msra.mxu0 %v4525_v38  ;;  %v4587_v36 = vld [vmem:[#allocation12 + $0xb0] sm:$0xff]   ;;  %v4588_v38 = vld [vmem:[#allocation12 + $0xe8] sm:$0xff]  }
 0x197   :  { %3898 = vmatprep.subr.bf16.mxu0 %v4527_v41 }
 0x199   :  { %3873 = vmatpush3.bf16.msra.mxu1 %v4524_v6  ;;  %v4570_v6 = vld [vmem:[#allocation12 + $0x70] sm:$0xff]  }
 0x19a   :  { %3874 = vmatprep.subr.bf16.mxu1 %v4526_v40  ;;  %3899 = vmatpush3.bf16.msra.mxu0 %v4529_v44  ;;  %v4589_v44 = vld [vmem:[#allocation12 + $0xa8] sm:$0xff]  }
 0x19b   :  { %3900 = vmatprep.subr.bf16.mxu0 %v4531_v46  ;;  %v4572_v46 = vld [vmem:[#allocation12 + $0x68] sm:$0xff]  }
 0x19d   :  { %3875 = vmatpush3.bf16.msra.mxu1 %v4528_v43  ;;  %v4571_v43 = vld [vmem:[#allocation12 + $0x30] sm:$0xff]  }
 0x19e   :  { %3876 = vmatprep.subr.bf16.mxu1 %v4530_v45  ;;  %3901 = vmatpush3.bf16.msra.mxu0 %v4533_v48 }
 0x19f   :  { %3930 = vmatprep.subr.bf16.mxu0 %v4535_v51 }
 0x1a1   :  { %3877 = vmatpush3.bf16.msra.mxu1 %v4532_v47  ;;  %2782 = vmatmul.mubr.bf16.vlgmr.msra.gmra.mxu0 %v4966_v22  ;;  %v4547_v22 = vld [vmem:[#allocation7 + $0x970] ss:$20 sps:$4 sm:$0xff]   ;;  %v4590_v47 = vld [vmem:[#allocation12 + $0xe0] sm:$0xff]  }
 0x1a2   :  { %3878 = vmatprep.subr.bf16.mxu1 %v4534_v49  ;;  %3931 = vmatpush3.bf16.msra.mxu0 %v4537_v53 }
 0x1a3   :  { %3932 = vmatprep.subr.bf16.mxu0 %v4539_v56  ;;  %2861 = vmatprep.mubr.bf16.mxu0 %v4987_v1  ;;  %v4551_v1 = vld [vmem:[#allocation7 + $0x948] ss:$20 sps:$4 sm:$0xff]  }
 0x1a5   :  { %3879 = vmatpush3.bf16.msra.mxu1 %v4536_v52  ;;  %v4573_v52 = vld [vmem:[#allocation12 + $0x28] sm:$0xff]  }
 0x1a6   :  { %3908 = vmatprep.subr.bf16.mxu1 %v4538_v54  ;;  %3933 = vmatpush3.bf16.msra.mxu0 %v4541_v58  ;;  %v4574_v54 = vld [vmem:[#allocation12 + $0x60] sm:$0xff]  }
 0x1a7   :  { %3934 = vmatprep.subr.bf16.mxu0 %v4543_v62  ;;  %v4575_v58 = vld [vmem:[#allocation12 + $0x20] sm:$0xff]   ;;  %v4576_v62 = vld [vmem:[#allocation12 + $0x58] sm:$0xff]  }
 0x1a8   :  { %2742 = vmatmul.mubr.bf16.vlgmr.msra.gmra.mxu1 %v4969_v26  ;;  %v4552_v26 = vld [vmem:[#allocation7 + $0x5b0] ss:$20 sps:$4 sm:$0xff]  }
 0x1a9   :  { %3909 = vmatpush3.bf16.msra.mxu1 %v4540_v57  ;;  %2821 = vmatprep.mubr.bf16.mxu1 %v4985_v61  ;;  %v4557_v61 = vld [vmem:[#allocation7 + $0x7e0] ss:$20 sps:$4 sm:$0xff]  }
 0x1aa   :  { %3910 = vmatprep.subr.bf16.mxu1 %v4542_v59  ;;  %3935 = vmatpush3.bf16.msra.mxu0 %v4545_v55  ;;  %v4593_v59 = vld [vmem:[#allocation12 + $0x98] sm:$0xff]  }
 0x1ab   :  { %3936 = vmatprep.subr.bf16.mxu0 %v4547_v22  ;;  %v4577_v55 = vld [vmem:[#allocation12 + $0x18] sm:$0xff]   ;;  %v4578_v22 = vld [vmem:[#allocation12 + $0x50] sm:$0xff]  }
 0x1ad   :  { %3911 = vmatpush3.bf16.msra.mxu1 %v4544_v63  ;;  %v4594_v63 = vld [vmem:[#allocation12 + $0xd0] sm:$0xff]  }
 0x1ae   :  { %3912 = vmatprep.subr.bf16.mxu1 %v4546_v2  ;;  %3937 = vmatpush3.bf16.msra.mxu0 %v4549_v5  ;;  %v4595_v2 = vld [vmem:[#allocation12 + $0x90] sm:$0xff]  }
 0x1af   :  { %3938 = vmatprep.subr.bf16.mxu0 %v4551_v1  ;;  %v4579_v5 = vld [vmem:[#allocation12 + $0x10] sm:$0xff]  }
 0x1b1   :  { %3913 = vmatpush3.bf16.msra.mxu1 %v4548_v3  ;;  %v4596_v3 = vld [vmem:[#allocation12 + $0xc8] sm:$0xff]  }
 0x1b2   :  { %3914 = vmatprep.subr.bf16.mxu1 %v4550_v9  ;;  %3939 = vmatpush3.bf16.msra.mxu0 %v4553_v10  ;;  %v4597_v9 = vld [vmem:[#allocation12 + $0x88] sm:$0xff]   ;;  %v4598_v10 = vld [vmem:[#allocation12 + $0xc0] sm:$0xff]  }
 0x1b3   :  { %3940 = vmatprep.subr.bf16.mxu0 %v4555_v12  ;;  %v4599_v12 = vld [vmem:[#allocation12 + $0x80] sm:$0xff]  }
 0x1b5   :  { %3915 = vmatpush3.bf16.msra.mxu1 %v4552_v26  ;;  %v4580_v26 = vld [vmem:[#allocation12 + $0x48] sm:$0xff]  }
 0x1b6   :  { %3916 = vmatprep.subr.bf16.mxu1 %v4554_v11  ;;  %3941 = vmatpush3.bf16.msra.mxu0 %v4557_v61  ;;  %v4581_v11 = vld [vmem:[#allocation12 + $0x8] sm:$0xff]   ;;  %v4582_v61 = vld [vmem:[#allocation12 + $0x40] sm:$0xff]  }
 0x1b7   :  { %3942 = vmatprep.subr.bf16.mxu0 %v4559_v15 }
 0x1b9   :  { %3917 = vmatpush3.bf16.msra.mxu1 %v4556_v13 }
 0x1ba   :  { %3918 = vmatprep.subr.bf16.mxu1 %v4558_v14  ;;  %3943 = vmatpush3.bf16.msra.mxu0 %v4561_v18  ;;  %v4583_v14 = vld [vmem:[#allocation12] sm:$0xff]   ;;  %v4603_v18 = vld [vmem:[#allocation12 + $0x130] sm:$0xff]  }
 0x1bb   :  { %3944 = vmatprep.subr.bf16.mxu0 %v4563_v20  ;;  %v4605_v20 = vld [vmem:[#allocation12 + $0x120] sm:$0xff]  }
 0x1bd   :  { %3919 = vmatpush3.bf16.msra.mxu1 %v4560_v17  ;;  %v4602_v17 = vld [vmem:[#allocation12 + $0x138] sm:$0xff]  }
 0x1be   :  { %3920 = vmatprep.subr.bf16.mxu1 %v4562_v19  ;;  %3945 = vmatpush3.bf16.msra.mxu0 %v4565_v24  ;;  %v4604_v19 = vld [vmem:[#allocation12 + $0x128] sm:$0xff]  }
 0x1bf   :  { %3974 = vmatprep.subr.bf16.mxu0 %v4584_v4 }
 0x1c1   :  { %3921 = vmatpush3.bf16.msra.mxu1 %v4564_v23  ;;  %2862 = vmatmul.mubr.bf16.vlgmr.msra.gmra.mxu0 %v4993_v39  ;;  %v5032_v33 = vpop.f32.mrf.mxu0  ;;  %v2459_v39 = vadd.f32 %v5016_v16, %v2418_v34  ;;  %v4592_v16 = vld [vmem:[#allocation12 + $0xd8] sm:$0xff]   ;;  %v4609_v34 = vld [vmem:[#allocation12 + $0x100] sm:$0xff]  }
 0x1c2   :  { %3922 = vmatprep.subr.bf16.mxu1 %v4566_v25  ;;  %3975 = vmatpush3.bf16.msra.mxu0 %v4585_v8  ;;  %v4606_v23 = vld [vmem:[#allocation12 + $0x118] sm:$0xff]  }
 0x1c3   :  { %v2540_v37 = vpop.f32.mrf.mxu0  ;;  %3976 = vmatprep.subr.bf16.mxu0 %v4586_v32  ;;  %v4608_v32 = vld [vmem:[#allocation12 + $0x108] sm:$0xff]  }
 0x1c5   :  { %3923 = vmatpush3.bf16.msra.mxu1 %v4567_v29  ;;  %v2542_v41 = vpop.f32.mrf.mxu0 }
 0x1c6   :  { %3952 = vmatprep.subr.bf16.mxu1 %v4568_v31  ;;  %3977 = vmatpush3.bf16.msra.mxu0 %v4587_v36  ;;  %v706_v36 = vsub.s32 3, %v4950_v50 }
 0x1c7   :  { %v2543_v45 = vpop.f32.mrf.mxu0  ;;  %3978 = vmatprep.subr.bf16.mxu0 %v4588_v38 }
 0x1c8   :  { %v2497_v40 = vpop.f32.mrf.mxu1  ;;  %2822 = vmatmul.mubr.bf16.vlgmr.msra.gmra.mxu1 %v4998_v42  ;;  %v4591_v42 = vld [vmem:[#allocation12 + $0xa0] sm:$0xff]  }
 0x1c9   :  { %3953 = vmatpush3.bf16.msra.mxu1 %v4569_v35  ;;  %v2498_v1 = vadd.f32 %v2497_v40, %v5023_v30  ;;  %v702_v35 = vsub.s32 2, %v4950_v50 }
 0x1ca   :  { %v2499_v27 = vpop.f32.mrf.mxu1  ;;  %3954 = vmatprep.subr.bf16.mxu1 %v4570_v6  ;;  %3979 = vmatpush3.bf16.msra.mxu0 %v4589_v44  ;;  %v707_v6 = vrot.slane %v5010_v7, %v706_v36 }
 0x1cb   :  { %v2500_v48 = vadd.f32 %v2499_v27, %v2459_v39  ;;  %3980 = vmatprep.subr.bf16.mxu0 %v4590_v47  ;;  %v2539_v13 = vadd.f32 %v5032_v33, %v2498_v1 }
 0x1cc   :  { %v2501_v49 = vpop.f32.mrf.mxu1 }
 0x1cd   :  { %v2541_v51 = vadd.f32 %v2540_v37, %v2500_v48  ;;  %3955 = vmatpush3.bf16.msra.mxu1 %v4571_v43  ;;  %v2869_v15 = vmax.f32 %v2539_v13, 0.0  ;;  %v703_v37 = vrot.slane %v5010_v7, %v702_v35  ;;  %v3399_v35 = vld [vmem:[#allocation15 + $0x58] sm:$0xff] }
 0x1ce   :  { %v2502_v53 = vpop.f32.mrf.mxu1  ;;  %3956 = vmatprep.subr.bf16.mxu1 %v4572_v46  ;;  %3981 = vmatpush3.bf16.msra.mxu0 %v4591_v42 }
 0x1cf   :  { %v2870_v56 = vmax.f32 %v2541_v51, 0.0  ;;  %3982 = vmatprep.subr.bf16.mxu0 %v4592_v16  ;;  %v2879_v30 = vpack.c.bf16 %v2869_v15, %v2869_v15  ;;  %v3492_v16 = vld [vmem:[#allocation6] ss:$0 sm:$0xff] }
 0x1d1   :  { %v2880_v57 = vpack.c.bf16 %v2870_v56, %v2870_v56  ;;  %3957 = vmatpush3.bf16.msra.mxu1 %v4573_v52 }
 0x1d2   :  { %3958 = vmatprep.subr.bf16.mxu1 %v4574_v54  ;;  %3983 = vmatpush3.bf16.msra.mxu0 %v4593_v59  ;;  %v248_v59 = vadd.f32 %v3492_v16, %v5005_v60 }
 0x1d3   :  { %3236 = vmatprep.mubr.bf16.mxu1 %v2880_v57  ;;  %3984 = vmatprep.subr.bf16.mxu0 %v4594_v63  ;;  %v4601_v63 = vld [vmem:[#allocation10] sm:$0xff]  }
 0x1d5   :  { %3959 = vmatpush3.bf16.msra.mxu1 %v4575_v58  ;;  %v4600_v58 = vld [vmem:[#allocation10 + $0x8] sm:$0xff]  }
 0x1d6   :  { %3960 = vmatprep.subr.bf16.mxu1 %v4576_v62  ;;  %3985 = vmatpush3.bf16.msra.mxu0 %v4595_v2 }
 0x1d7   :  { %3986 = vmatprep.subr.bf16.mxu0 %v4596_v3 }
 0x1d9   :  { %3961 = vmatpush3.bf16.msra.mxu1 %v4577_v55  ;;  %v251_v55 = vmax.f32 %v248_v59, 0.0 }
 0x1da   :  { %3962 = vmatprep.subr.bf16.mxu1 %v4578_v22  ;;  %3987 = vmatpush3.bf16.msra.mxu0 %v4597_v9 }
 0x1db   :  { %3988 = vmatprep.subr.bf16.mxu0 %v4598_v10  ;;  %v2874_v2 = vpack.c.bf16 %v251_v55, %v251_v55  ;;  %v3857_v55 = vld [vmem:[#allocation13] ss:$0 sm:$0xff] }
 0x1dd   :  { %3963 = vmatpush3.bf16.msra.mxu1 %v4579_v5 }
 0x1de   :  { %3964 = vmatprep.subr.bf16.mxu1 %v4580_v26  ;;  %3989 = vmatpush3.bf16.msra.mxu0 %v4599_v12 }
 0x1df   :  { %4056 = vmatprep.subr.bf16.mxu0 %v4838_v0 }
 0x1e1   :  { %3965 = vmatpush3.bf16.msra.mxu1 %v4581_v11  ;;  %v710_v11 = vsub.s32 4, %v4950_v50 }
 0x1e2   :  { %3966 = vmatprep.subr.bf16.mxu1 %v4582_v61 }
 0x1e3   :  { %v711_v12 = vrot.slane %v5010_v7, %v710_v11  ;;  %v3403_v7 = vld [vmem:[#allocation15 + $0x78] sm:$0xff] }
 0x1e5   :  { %3967 = vmatpush3.bf16.msra.mxu1 %v4583_v14 }
 0x1e6   :  { %4036 = vmatprep.subr.bf16.mxu1 %v4838_v0 }
 0x1e8   :  { %3237 = vmatmul.mubr.bf16.vlgmr.msra.gmra.mxu1 %v2879_v30 }
 0x1e9   :  { %4052 = vmatprep.mubr.msk.bf16.mxu1 %vm4839_vm0, %v4838_v0  ;;  %4037 = vmatpush3.bf16.msra.mxu1 %v4602_v17 }
 0x1ea   :  { %4038 = vmatprep.subr.bf16.mxu1 %v4838_v0 }
 0x1ed   :  { %4039 = vmatpush3.bf16.msra.mxu1 %v4603_v18 }
 0x1ee   :  { %4040 = vmatprep.subr.bf16.mxu1 %v4838_v0 }
 0x1f1   :  { %4041 = vmatpush3.bf16.msra.mxu1 %v4604_v19 }
 0x1f2   :  { %4042 = vmatprep.subr.bf16.mxu1 %v4838_v0 }
 0x1f5   :  { %4043 = vmatpush3.bf16.msra.mxu1 %v4605_v20 }
 0x1f6   :  { %4044 = vmatprep.subr.bf16.mxu1 %v4838_v0 }
 0x1f9   :  { %4045 = vmatpush3.bf16.msra.mxu1 %v4606_v23 }
 0x1fa   :  { %4046 = vmatprep.subr.bf16.mxu1 %v4838_v0 }
 0x1fd   :  { %4047 = vmatpush3.bf16.msra.mxu1 %v4607_v28 }
 0x1fe   :  { %4048 = vmatprep.subr.bf16.mxu1 %v4838_v0 }
 0x201   :  { %v2620_v21 = vpop.f32.mrf.mxu0  ;;  %4049 = vmatpush3.bf16.msra.mxu1 %v4608_v32  ;;  %v3401_v32 = vld [vmem:[#allocation15 + $0x68] sm:$0xff] }
 0x202   :  { %4050 = vmatprep.subr.bf16.mxu1 %v4838_v0 }
 0x203   :  { %v2622_v24 = vpop.f32.mrf.mxu0 }
 0x205   :  { %v2624_v4 = vpop.f32.mrf.mxu0  ;;  %4051 = vmatpush3.bf16.msra.mxu1 %v4609_v34 }
 0x207   :  { %v2625_v8 = vpop.f32.mrf.mxu0 }
 0x208   :  { %v2579_v25 = vpop.f32.mrf.mxu1 }
 0x209   :  { %v2580_v38 = vadd.f32 %v2579_v25, %v703_v37  ;;  %v3398_v37 = vld [vmem:[#allocation15 + $0x50] sm:$0xff] }
 0x20a   :  { %v2581_v29 = vpop.f32.mrf.mxu1 }
 0x20b   :  { %v2582_v41 = vadd.f32 %v2581_v29, %v707_v6  ;;  %v2621_v43 = vadd.f32 %v2620_v21, %v2580_v38 }
 0x20c   :  { %v2583_v31 = vpop.f32.mrf.mxu1 }
 0x20d   :  { %v2623_v46 = vadd.f32 %v2622_v24, %v2582_v41  ;;  %v3402_v31 = vld [vmem:[#allocation15 + $0x70] sm:$0xff] }
 0x20e   :  { %v2584_v33 = vpop.f32.mrf.mxu1 }
 0x20f   :  { %v3400_v33 = vld [vmem:[#allocation15 + $0x60] sm:$0xff] }
 0x241   :  { %v2702_v40 = vpop.f32.mrf.mxu0 }
 0x243   :  { %v2704_v39 = vpop.f32.mrf.mxu0 }
 0x245   :  { %v2706_v27 = vpop.f32.mrf.mxu0 }
 0x246   :  { %v3393_v27 = vld [vmem:[#allocation15 + $0x28] sm:$0xff] }
 0x247   :  { %v2707_v48 = vpop.f32.mrf.mxu0 }
 0x248   :  { %v2661_v44 = vpop.f32.mrf.mxu1  ;;  %v3389_v48 = vld [vmem:[#allocation15 + $0x8] sm:$0xff] }
 0x249   :  { %v2662_v45 = vadd.f32 %v2661_v44, %v2621_v43  ;;  %v3395_v43 = vld [vmem:[#allocation15 + $0x38] sm:$0xff]  ;;  %v3394_v44 = vld [vmem:[#allocation15 + $0x30] sm:$0xff] }
 0x24a   :  { %v2663_v47 = vpop.f32.mrf.mxu1 }
 0x24b   :  { %v2703_v49 = vadd.f32 %v2702_v40, %v2662_v45  ;;  %v2664_v51 = vadd.f32 %v2663_v47, %v2623_v46  ;;  %v3397_v40 = vld [vmem:[#allocation15 + $0x48] sm:$0xff]  ;;  %v3392_v45 = vld [vmem:[#allocation15 + $0x20] sm:$0xff]  ;;  %v3391_v46 = vld [vmem:[#allocation15 + $0x18] sm:$0xff] }
 0x24c   :  { %v2665_v52 = vpop.f32.mrf.mxu1  ;;  %v3390_v47 = vld [vmem:[#allocation15 + $0x10] sm:$0xff] }
 0x24d   :  { %v2705_v42 = vadd.f32 %v2704_v39, %v2664_v51  ;;  %v2871_v53 = vmax.f32 %v2703_v49, 0.0  ;;  %v3396_v39 = vld [vmem:[#allocation15 + $0x40] sm:$0xff] }
 0x24e   :  { %v2666_v54 = vpop.f32.mrf.mxu1  ;;  %v3388_v49 = vld [vmem:[#allocation15] sm:$0xff] }
 0x24f   :  { %v2872_v56 = vmax.f32 %v2705_v42, 0.0  ;;  %v2881_v62 = vpack.c.bf16 %v2871_v53, %v2871_v53 }
 0x251   :  { %v2882_v57 = vpack.c.bf16 %v2872_v56, %v2872_v56 }
 0x253   :  { %3276 = vmatprep.mubr.bf16.mxu0 %v2882_v57 }
 0x254   :  { %3277 = vmatmul.mubr.bf16.vlgmr.msra.gmra.mxu0 %v2881_v62 }
 0x255   :  { %4057 = vmatpush3.bf16.msra.mxu0 %v4600_v58  ;;  %4060 = vmatprep.mubr.msk.bf16.mxu0 %vm4839_vm0, %v4838_v0 }
 0x256   :  { %4058 = vmatprep.subr.bf16.mxu0 %v4838_v0 }
 0x259   :  { %4059 = vmatpush3.bf16.msra.mxu0 %v4601_v63 }
 0x25a   :  { %4064 = vmatprep.subr.mxu0 %v4838_v0 }
 0x25c   :  { %4061 = vmatmul.mubr.msk.bf16.vlgmr.msra.gmra.mxu0 %vm177_vm1, %v2874_v2 }
 0x25d   :  { %4096 = vmatprep.mubr.msk.f32.mxu0 %vm4839_vm0, %v4838_v0  ;;  %4065 = vmatpush3.msra.mxu0 %v3403_v7 }
 0x25e   :  { %4066 = vmatprep.subr.mxu0 %v4838_v0 }
 0x25f   :  { %4067 = vmatpush3.msra.mxu0 %v3402_v31 }
 0x260   :  { %4068 = vmatprep.subr.mxu0 %v4838_v0 }
 0x261   :  { %v3902_v60 = vpop.f32.mrf.mxu0  ;;  %4069 = vmatpush3.msra.mxu0 %v3401_v32 }
 0x262   :  { %4070 = vmatprep.subr.mxu0 %v4838_v0 }
 0x263   :  { %v3903_v22 = vpop.f32.mrf.mxu0  ;;  %4071 = vmatpush3.msra.mxu0 %v3400_v33 }
 0x264   :  { %v3904_v15 = vadd.f32 %v3903_v22, %v3902_v60  ;;  %4072 = vmatprep.subr.mxu0 %v4838_v0 }
 0x265   :  { %v3905_v5 = vpop.f32.mrf.mxu0  ;;  %4073 = vmatpush3.msra.mxu0 %v3399_v35 }
 0x266   :  { %4074 = vmatprep.subr.mxu0 %v4838_v0 }
 0x267   :  { %v3906_v1 = vpop.f32.mrf.mxu0  ;;  %4075 = vmatpush3.msra.mxu0 %v3398_v37 }
 0x268   :  { %v3880_v3 = vpop.f32.mrf.mxu1  ;;  %4076 = vmatprep.subr.mxu0 %v4838_v0 }
 0x269   :  { %4077 = vmatpush3.msra.mxu0 %v3397_v40 }
 0x26a   :  { %v3881_v9 = vpop.f32.mrf.mxu1  ;;  %4078 = vmatprep.subr.mxu0 %v4838_v0 }
 0x26b   :  { %v3882_v13 = vadd.f32 %v3881_v9, %v3880_v3  ;;  %4079 = vmatpush3.msra.mxu0 %v3396_v39  ;;  %v3858_v9 = vld [vmem:[#allocation16] ss:$0 sm:$0xff] }
 0x26c   :  { %v3883_v26 = vpop.f32.mrf.mxu1  ;;  %4080 = vmatprep.subr.mxu0 %v4838_v0 }
 0x26d   :  { %v2744_v30 = vadd.f32 %v3882_v13, %v711_v12  ;;  %4081 = vmatpush3.msra.mxu0 %v3395_v43 }
 0x26e   :  { %v3884_v10 = vpop.f32.mrf.mxu1  ;;  %4082 = vmatprep.subr.mxu0 %v4838_v0 }
 0x26f   :  { %v2784_v21 = vadd.f32 %v3904_v15, %v2744_v30  ;;  %4083 = vmatpush3.msra.mxu0 %v3394_v44 }
 0x270   :  { %4084 = vmatprep.subr.mxu0 %v4838_v0 }
 0x271   :  { %4085 = vmatpush3.msra.mxu0 %v3393_v27 }
 0x272   :  { %4086 = vmatprep.subr.mxu0 %v4838_v0 }
 0x273   :  { %4087 = vmatpush3.msra.mxu0 %v3392_v45 }
 0x274   :  { %4088 = vmatprep.subr.mxu0 %v4838_v0 }
 0x275   :  { %4089 = vmatpush3.msra.mxu0 %v3391_v46 }
 0x276   :  { %4090 = vmatprep.subr.mxu0 %v4838_v0 }
 0x277   :  { %4091 = vmatpush3.msra.mxu0 %v3390_v47 }
 0x278   :  { %4092 = vmatprep.subr.mxu0 %v4838_v0 }
 0x279   :  { %4093 = vmatpush3.msra.mxu0 %v3389_v48 }
 0x27a   :  { %4094 = vmatprep.subr.mxu0 %v4838_v0 }
 0x27b   :  { %4095 = vmatpush3.msra.mxu0 %v3388_v49 }
 0x281   :  { %v3946_v61 = vpop.f32.mrf.mxu0 }
 0x283   :  { %v3947_v14 = vpop.f32.mrf.mxu0 }
 0x284   :  { %v3948_v25 = vadd.f32 %v3947_v14, %v3946_v61 }
 0x285   :  { %v3949_v18 = vpop.f32.mrf.mxu0 }
 0x287   :  { %v3950_v20 = vpop.f32.mrf.mxu0 }
 0x288   :  { %v3924_v17 = vpop.f32.mrf.mxu1 }
 0x28a   :  { %v3925_v19 = vpop.f32.mrf.mxu1 }
 0x28b   :  { %v3926_v23 = vadd.f32 %v3925_v19, %v3924_v17 }
 0x28c   :  { %v3927_v24 = vpop.f32.mrf.mxu1 }
 0x28d   :  { %v2824_v4 = vadd.f32 %v3926_v23, %v2784_v21 }
 0x28e   :  { %v3928_v28 = vpop.f32.mrf.mxu1 }
 0x28f   :  { %v2864_v29 = vadd.f32 %v3948_v25, %v2824_v4 }
 0x291   :  { %v2873_v8 = vmax.f32 %v2864_v29, 0.0 }
 0x293   :  { %v2883_v50 = vpack.c.bf16 %v2873_v8, %v2873_v8 }
 0x295   :  { %4053 = vmatmul.mubr.bf16.vlgmr.msra.gmra.mxu1 %v2883_v50 }
 0x2a8   :  { %v3968_v34 = vpop.f32.mrf.mxu1 }
 0x2aa   :  { %v3969_v36 = vpop.f32.mrf.mxu1 }
 0x2ab   :  { %v3970_v6 = vadd.f32 %v3969_v36, %v3968_v34 }
 0x2ac   :  { %v3971_v38 = vpop.f32.mrf.mxu1 }
 0x2ae   :  { %v3972_v41 = vpop.f32.mrf.mxu1 }
 0x314   :  { %v3990_v51 = vpop.f32.mrf.mxu0 }
 0x316   :  { %v3991_v52 = vpop.f32.mrf.mxu0 }
 0x317   :  { %v3992_v58 = vadd.f32 %v3991_v52, %v3990_v51 }
 0x318   :  { %v3993_v42 = vpop.f32.mrf.mxu0 }
 0x319   :  { %v3279_v59 = vadd.f32 %v3992_v58, %v3970_v6 }
 0x31a   :  { %v3994_v53 = vpop.f32.mrf.mxu0 }
 0x31c   :  { %v3373_v54 = vpop.f32.mrf.mxu0 }
 0x31e   :  { %v4062_v16 = vpop.f32.mrf.mxu0 }
 0x320   :  { %v3376_v56 = vpop.f32.mrf.mxu0 }
 0x322   :  { %v4063_v57 = vpop.f32.mrf.mxu0 }
 0x355   :  { %v3318_v62 = vpop.f32.mrf.mxu1 }
 0x356   :  { %v3319_v63 = vadd.f32 %v3318_v62, %v3279_v59 }
 0x357   :  { %v4054_v2 = vpop.f32.mrf.mxu1 }
 0x358   :  { %v3374_v60 = vadd.f32 %v3373_v54, %v3319_v63 }
 0x359   :  { %v3321_v22 = vpop.f32.mrf.mxu1 }
 0x35a   :  { %v3386_v3 = vadd.f32 %v3857_v55, %v3374_v60 }
 0x35b   :  { %v4055_v0 = vpop.f32.mrf.mxu1 }
 0x35c   :  { %v3387_v5 = vmax.f32 %v3386_v3, 0.0 }
 0x35e   :  { %4097 = vmatmul.mubr.f32.vlgmr.msra.gmra.mxu0 %v3387_v5 }
 0x41e   :  { %v3477_v1 = vpop.f32.mrf.mxu0 }
 0x41f   :  { %v3478_v26 = vadd.f32 %v3858_v9, %v3477_v1 }
 0x420   :  { %v4098_v10 = vpop.f32.mrf.mxu0 }
 0x421   :  { %3481 = vst [vmem:[%s5093_s11] sm:$0x3] %v3478_v26 }
 0x422   :  { %3486 = vsyncpa [#allocation3], 1 }
 0x423   :  { %3487 = vsyncpa [#allocation5], 1 }
 0x424   :  { %3488 = vsyncpa [#allocation8], 1 }
 0x425   :  { %3489 = vsyncpa [#allocation11], 1 }
 0x426   :  { %3490 = vsyncpa [#allocation14], 1 }
 0x427   :  { %3491 = vsyncpa [#allocation17], 1 }

</bundles_post_ra>
